<compile_context>
chip_gen: v7x
topology: tpu7x:2x2x1
jax: 0.10.0
libtpu: 0.0.40
codegen_flags: <defaults>
</compile_context>

<pallas_src>
import functools
import math

import jax
import jax.numpy as jnp
from jax import lax
from jax.experimental import pallas as pl
from jax.experimental.pallas import tpu as pltpu

EPS = 1e-5
BF16 = jnp.bfloat16


def _layernorm(v, g, b):
    mu = jnp.mean(v, axis=-1, keepdims=True)
    var = jnp.mean(jnp.square(v - mu), axis=-1, keepdims=True)
    return (v - mu) * lax.rsqrt(var + EPS) * g + b


# ---------------------------------------------------------------- kernels ---

def fused_resblock_kernel(H,
                          x_ref, pos_ref, mask_ref,
                          ln1g, ln1b, wqkv, bqkv, wo, bo,
                          ln2g, ln2b, wfc, bfc, wpr, bpr,
                          o_ref, attn_sc):
    """One grid step = (batch tile b, layer l) of the CLIP transformer."""
    l = pl.program_id(1)
    R, D = x_ref.shape                     # R = Bb * S flat rows
    S = mask_ref.shape[0]
    Bb = R // S
    hd = D // H
    scale = 1.0 / math.sqrt(hd)

    # Layer 0: fold in the positional embedding (pre-tiled to (Bb*S, D)); x
    # then stays resident in the output block for l = 0 .. L-1 (output index
    # map is independent of l).
    @pl.when(l == 0)
    def _():
        o_ref[...] = x_ref[...] + pos_ref[...]

    x = o_ref[...]                          # fp32 (R, D) activations

    # ---- attention branch ---------------------------------------------------
    h = _layernorm(x, ln1g[0], ln1b[0])
    qkv = jnp.dot(h.astype(BF16), wqkv[0],
                  preferred_element_type=jnp.float32) + bqkv[0]
    q = (qkv[:, :D] * scale).astype(BF16)
    k = qkv[:, D:2 * D].astype(BF16)
    v = qkv[:, 2 * D:].astype(BF16)
    neg = mask_ref[...]                     # hoisted additive causal mask (S,S)

    # Static loop over heads only (H instances, not Bb*H): each iteration runs
    # one head's attention batched over the Bb sequences and writes its result
    # in place into a bf16 VMEM slab.
    # NOTE: for production shapes, pad hd to a 128-lane multiple (or process
    # head pairs) so the column slices below are free views, and keep S a
    # multiple of 8 so the (R, hd) -> (Bb, S, hd) view is relayout-free.
    for hh in range(H):
        c0 = hh * hd
        qh = q[:, c0:c0 + hd].reshape(Bb, S, hd)
        kh = k[:, c0:c0 + hd].reshape(Bb, S, hd)
        vh = v[:, c0:c0 + hd].reshape(Bb, S, hd)
        s = jnp.einsum("bqd,bkd->bqk", qh, kh,
                       preferred_element_type=jnp.float32) + neg
        s = s - jnp.max(s, axis=-1, keepdims=True)
        p = jnp.exp(s)
        p = p * pl.reciprocal(jnp.sum(p, axis=-1, keepdims=True), approx=True)
        a = jnp.einsum("bqk,bkd->bqd", p.astype(BF16), vh,
                       preferred_element_type=jnp.float32)
        attn_sc[:, c0:c0 + hd] = a.reshape(R, hd).astype(BF16)

    attn = jnp.dot(attn_sc[...], wo[0],
                   preferred_element_type=jnp.float32) + bo[0]
    x = x + attn

    # ---- MLP branch (QuickGELU) ----------------------------------------------
    # (For very large towers on v7x, chunk the 4D hidden dim here to bound the
    #  fp32 intermediate instead of shrinking the batch tile.)
    h2 = _layernorm(x, ln2g[0], ln2b[0])
    m = jnp.dot(h2.astype(BF16), wfc[0],
                preferred_element_type=jnp.float32) + bfc[0]
    m = m * jax.nn.sigmoid(1.702 * m)
    m = jnp.dot(m.astype(BF16), wpr[0],
                preferred_element_type=jnp.float32) + bpr[0]

    o_ref[...] = x + m


def head_kernel(x_ref, g_ref, b_ref, proj_ref, o_ref):
    # LayerNorm only the B gathered EOT rows, then project -> one dense store.
    ln = _layernorm(x_ref[...], g_ref[...], b_ref[...])
    o_ref[...] = jnp.dot(ln.astype(BF16), proj_ref[...],
                         preferred_element_type=jnp.float32)


# ---------------------------------------------------------------- wrapper ---

def _vmem_capacity_bytes():
    try:
        return int(pltpu.get_tpu_info().vmem_capacity_bytes)
    except Exception:
        return 128 << 20            # v5e/v6e; v7x reports its own 64 MiB


def _estimate_vmem(Bb, S, D, Dm, layer_bytes, pos_bytes):
    """Per-step VMEM working set (corrected to count live intermediates)."""
    act = Bb * S * D * 4
    hid = Bb * S * Dm * 4
    # double-buffered stacked layer weights + double-buffered in/out activation
    # blocks + fp32 qkv (3x act) + bf16 q/k/v (1.5x act) + bf16 attn slab
    # (0.5x act) + fp32 MLP hidden + LN / residual temporaries + pos + mask.
    return int(2 * layer_bytes + pos_bytes
               + 4 * act            # in + out activation blocks, 2x buffered
               + 3 * act            # fp32 qkv
               + 2 * act            # bf16 q/k/v + bf16 attention slab
               + hid                # fp32 MLP hidden
               + 2 * act            # LN / residual temporaries
               + S * S * 4)


def _pick_block_b(B, S, D, Dm, layer_bytes, vmem_budget, target_rows):
    """Largest divisor of B with Bb*S <= target_rows that fits the VMEM budget,
    preferring B//Bb >= 2 so the parallel batch axis can feed both v7x cores."""
    divs = [bb for bb in range(1, B + 1) if B % bb == 0]
    ok = [bb for bb in divs
          if bb * S <= max(target_rows, S)
          and _estimate_vmem(bb, S, D, Dm, layer_bytes,
                             bb * S * D * 4) <= vmem_budget]
    if not ok:
        ok = [1]
    two = [bb for bb in ok if B // bb >= 2]
    return max(two) if two else max(ok)


def text_encoder_forward(prompts, tokenized_prompts, params, *,
                         block_b=None, target_rows=1024):
    B, S, D = prompts.shape
    H = params["H"]
    Dout = params["proj"].shape[-1]
    Dm = params["wfc"].shape[-1]
    L = params["wqkv"].shape[0]

    layer_keys = ("ln1g", "ln1b", "wqkv", "bqkv", "wo", "bo",
                  "ln2g", "ln2b", "wfc", "bfc", "wpr", "bpr")
    layer_arrays = [params[k] for k in layer_keys]
    layer_bytes = sum((a.size // a.shape[0]) * a.dtype.itemsize
                      for a in layer_arrays)

    vmem_cap = _vmem_capacity_bytes()
    vmem_budget = int(0.75 * vmem_cap)      # headroom for compiler scratch
    Bb = (_pick_block_b(B, S, D, Dm, layer_bytes, vmem_budget, target_rows)
          if block_b is None else block_b)
    assert B % Bb == 0 and D % H == 0
    R = Bb * S

    est = _estimate_vmem(Bb, S, D, Dm, layer_bytes, R * D * 4)
    vmem_limit = int(min(vmem_budget, max(32 << 20, int(1.5 * est))))

    def stacked_spec(arr):
        rest = arr.ndim - 1
        return pl.BlockSpec((1,) + arr.shape[1:],
                            lambda b, l, _r=rest: (l,) + (0,) * _r)

    # Flat (B*S, D) activation layout in HBM; positional embedding pre-tiled to
    # one (Bb*S, D) tile (constant index_map -> fetched once, stays resident);
    # causal mask built once on the host side of the call.
    x0 = prompts.reshape(B * S, D)
    pos_tile = jnp.tile(params["pos"], (Bb, 1))
    rows = jnp.arange(S, dtype=jnp.int32)[:, None]
    cols = jnp.arange(S, dtype=jnp.int32)[None, :]
    mask = jnp.where(cols > rows, jnp.float32(-1e30), jnp.float32(0.0))

    # 1+2) x = prompts + pos, then the whole residual-block stack, fused.
    x = pl.pallas_call(
        functools.partial(fused_resblock_kernel, H),
        out_shape=jax.ShapeDtypeStruct((B * S, D), jnp.float32),
        grid=(B // Bb, L),
        in_specs=[pl.BlockSpec((R, D), lambda b, l: (b, 0)),
                  pl.BlockSpec((R, D), lambda b, l: (0, 0)),
                  pl.BlockSpec((S, S), lambda b, l: (0, 0))]
                 + [stacked_spec(a) for a in layer_arrays],
        out_specs=pl.BlockSpec((R, D), lambda b, l: (b, 0)),
        scratch_shapes=[pltpu.VMEM((R, D), BF16)],
        compiler_params=pltpu.CompilerParams(
            dimension_semantics=("parallel", "arbitrary"),
            vmem_limit_bytes=vmem_limit),
    )(x0, pos_tile, mask, *layer_arrays)

    # 3) EOT gather in plain JAX (touches only B rows of HBM; CLIP convention:
    #    EOT token has the highest id), then ln_final + text_projection on the
    #    dense (B, D) gathered rows in a single small kernel.
    eot = jnp.argmax(tokenized_prompts, axis=-1).astype(jnp.int32)
    xr = x[jnp.arange(B, dtype=jnp.int32) * S + eot]        # (B, D)

    out = pl.pallas_call(
        head_kernel,
        out_shape=jax.ShapeDtypeStruct((B, Dout), jnp.float32),
        grid=(1,),
        in_specs=[pl.BlockSpec((B, D), lambda i: (0, 0)),
                  pl.BlockSpec((1, D), lambda i: (0, 0)),
                  pl.BlockSpec((1, D), lambda i: (0, 0)),
                  pl.BlockSpec((D, Dout), lambda i: (0, 0))],
        out_specs=pl.BlockSpec((B, Dout), lambda i: (0, 0)),
    )(xr, params["lnf_g"], params["lnf_b"], params["proj"])
    return out


# --------------------------------------------------- pure-JAX reference -----

def text_encoder_reference(prompts, tokenized_prompts, params):
    B, S, D = prompts.shape
    H = params["H"]
    hd = D // H
    L = params["wqkv"].shape[0]
    scale = 1.0 / math.sqrt(hd)

    x = prompts + params["pos"][None]
    rows = lax.broadcasted_iota(jnp.int32, (S, S), 0)
    cols = lax.broadcasted_iota(jnp.int32, (S, S), 1)
    neg = jnp.where(cols > rows, jnp.float32(-1e30), jnp.float32(0.0))

    for l in range(L):
        h = _layernorm(x, params["ln1g"][l], params["ln1b"][l])
        qkv = jnp.einsum("bsd,de->bse", h.astype(BF16), params["wqkv"][l],
                         preferred_element_type=jnp.float32) + params["bqkv"][l]
        q = (qkv[..., :D] * scale).astype(BF16)
        k = qkv[..., D:2 * D].astype(BF16)
        v = qkv[..., 2 * D:].astype(BF16)
        q = q.reshape(B, S, H, hd).transpose(0, 2, 1, 3)
        k = k.reshape(B, S, H, hd).transpose(0, 2, 1, 3)
        v = v.reshape(B, S, H, hd).transpose(0, 2, 1, 3)
        s = jnp.einsum("bhqd,bhkd->bhqk", q, k,
                       preferred_element_type=jnp.float32) + neg
        s = s - jnp.max(s, axis=-1, keepdims=True)
        p = jnp.exp(s)
        p = p / jnp.sum(p, axis=-1, keepdims=True)
        a = jnp.einsum("bhqk,bhkd->bhqd", p.astype(BF16), v,
                       preferred_element_type=jnp.float32)
        a = a.transpose(0, 2, 1, 3).reshape(B, S, D)
        x = x + jnp.einsum("bsd,de->bse", a.astype(BF16), params["wo"][l],
                           preferred_element_type=jnp.float32) + params["bo"][l]
        h2 = _layernorm(x, params["ln2g"][l], params["ln2b"][l])
        m = jnp.einsum("bsd,de->bse", h2.astype(BF16), params["wfc"][l],
                       preferred_element_type=jnp.float32) + params["bfc"][l]
        m = m * jax.nn.sigmoid(1.702 * m)
        x = x + jnp.einsum("bse,ed->bsd", m.astype(BF16), params["wpr"][l],
                           preferred_element_type=jnp.float32) + params["bpr"][l]

    eot = jnp.argmax(tokenized_prompts, axis=-1)
    xr = x[jnp.arange(B), eot]                              # (B, D)
    ln = _layernorm(xr, params["lnf_g"], params["lnf_b"])
    return jnp.dot(ln.astype(BF16), params["proj"],
                   preferred_element_type=jnp.float32)


# ---------------------------------------------------------------- params ----

def init_params(key, S, D, H, L, Dout, mlp_mult=4):
    Dm = mlp_mult * D
    ks = iter(jax.random.split(key, 16))

    def w(shape, scale=0.02, dtype=BF16):
        return (scale * jax.random.normal(next(ks), shape)).astype(dtype)

    return {
        "H": H,
        "pos": w((S, D), dtype=jnp.float32),        # positional_embedding
        # transformer layer weights, stacked along a leading L axis; matmul
        # weights stored bf16 (fp32 accumulation requested in the kernels)
        "ln1g": jnp.ones((L, 1, D), jnp.float32),
        "ln1b": jnp.zeros((L, 1, D), jnp.float32),
        "wqkv": w((L, D, 3 * D)),                   # in_proj, pre-transposed (x @ W)
        "bqkv": w((L, 1, 3 * D), dtype=jnp.float32),
        "wo":   w((L, D, D)),                       # out_proj
        "bo":   w((L, 1, D), dtype=jnp.float32),
        "ln2g": jnp.ones((L, 1, D), jnp.float32),
        "ln2b": jnp.zeros((L, 1, D), jnp.float32),
        "wfc":  w((L, D, Dm)),                      # mlp c_fc
        "bfc":  w((L, 1, Dm), dtype=jnp.float32),
        "wpr":  w((L, Dm, D)),                      # mlp c_proj
        "bpr":  w((L, 1, D), dtype=jnp.float32),
        "lnf_g": jnp.ones((1, D), jnp.float32),
        "lnf_b": jnp.zeros((1, D), jnp.float32),
        "proj": w((D, Dout)),                       # text_projection
    }


if __name__ == "__main__":
    B, S, D, H, L, Dout = 8, 8, 64, 4, 3, 64

    key = jax.random.PRNGKey(0)
    kp, kt, kw = jax.random.split(key, 3)

    prompts = (0.02 * jax.random.normal(kp, (B, S, D))).astype(jnp.float32)
    # token ids; EOT (max id) placed at known positions -> argmax target of the gather
    tokenized_prompts = jax.random.randint(kt, (B, S), 1, 100, dtype=jnp.int32)
    eot_pos = jnp.arange(B, dtype=jnp.int32) % S
    tokenized_prompts = tokenized_prompts.at[jnp.arange(B), eot_pos].set(1000)

    params = init_params(kw, S, D, H, L, Dout)

    out = text_encoder_forward(prompts, tokenized_prompts, params)
    out = jax.block_until_ready(out)

    ref = text_encoder_reference(prompts, tokenized_prompts, params)
    assert out.shape == (B, Dout), out.shape
    err = float(jnp.max(jnp.abs(out - ref)))
    assert jnp.allclose(out, ref, rtol=2e-2, atol=2e-2), err

    print("KERNEL_OK")
</pallas_src>

<mosaic_0001>
module attributes {stable_mosaic.version = 11 : i64} {
  func.func @fused_resblock_kernel(%arg0: i32, %arg1: i32, %arg2: memref<32x64xf32, #tpu.memory_space<vmem>>, %arg3: memref<32x64xf32, #tpu.memory_space<vmem>>, %arg4: memref<8x8xf32, #tpu.memory_space<vmem>>, %arg5: memref<1x1x64xf32, #tpu.memory_space<vmem>>, %arg6: memref<1x1x64xf32, #tpu.memory_space<vmem>>, %arg7: memref<1x64x192xbf16, #tpu.memory_space<vmem>>, %arg8: memref<1x1x192xf32, #tpu.memory_space<vmem>>, %arg9: memref<1x64x64xbf16, #tpu.memory_space<vmem>>, %arg10: memref<1x1x64xf32, #tpu.memory_space<vmem>>, %arg11: memref<1x1x64xf32, #tpu.memory_space<vmem>>, %arg12: memref<1x1x64xf32, #tpu.memory_space<vmem>>, %arg13: memref<1x64x256xbf16, #tpu.memory_space<vmem>>, %arg14: memref<1x1x256xf32, #tpu.memory_space<vmem>>, %arg15: memref<1x256x64xbf16, #tpu.memory_space<vmem>>, %arg16: memref<1x1x64xf32, #tpu.memory_space<vmem>>, %arg17: memref<32x64xf32, #tpu.memory_space<vmem>>, %arg18: memref<32x64xbf16, #tpu.memory_space<vmem>>) attributes {dimension_semantics = [#tpu.dimension_semantics<parallel>, #tpu.dimension_semantics<arbitrary>], iteration_bounds = array<i64: 2, 3>, scalar_prefetch = 0 : i64, scratch_operands = 1 : i64, tpu.core_type = #tpu.core_type<tc>, window_params = [{transform_indices = @transform_0, window_bounds = array<i64: 32, 64>}, {pipeline_mode = #tpu.pipeline_mode<synchronous>, transform_indices = @transform_1, window_bounds = array<i64: 32, 64>}, {pipeline_mode = #tpu.pipeline_mode<synchronous>, transform_indices = @transform_2, window_bounds = array<i64: 8, 8>}, {transform_indices = @transform_3, window_bounds = array<i64: 1, 1, 64>}, {transform_indices = @transform_4, window_bounds = array<i64: 1, 1, 64>}, {transform_indices = @transform_5, window_bounds = array<i64: 1, 64, 192>}, {transform_indices = @transform_6, window_bounds = array<i64: 1, 1, 192>}, {transform_indices = @transform_7, window_bounds = array<i64: 1, 64, 64>}, {transform_indices = @transform_8, window_bounds = array<i64: 1, 1, 64>}, {transform_indices = @transform_9, window_bounds = array<i64: 1, 1, 64>}, {transform_indices = @transform_10, window_bounds = array<i64: 1, 1, 64>}, {transform_indices = @transform_11, window_bounds = array<i64: 1, 64, 256>}, {transform_indices = @transform_12, window_bounds = array<i64: 1, 1, 256>}, {transform_indices = @transform_13, window_bounds = array<i64: 1, 256, 64>}, {transform_indices = @transform_14, window_bounds = array<i64: 1, 1, 64>}, {transform_indices = @transform_15, window_bounds = array<i64: 32, 64>}]} {
    %c0_i32 = arith.constant 0 : i32
    %0 = arith.cmpi eq, %arg1, %c0_i32 : i32
    %1 = arith.extui %0 : i1 to i32
    %c0_i32_0 = arith.constant 0 : i32
    %2 = arith.cmpi ne, %1, %c0_i32_0 : i32
    scf.if %2 {
      %c0_81 = arith.constant 0 : index
      %c0_82 = arith.constant 0 : index
      %208 = vector.load %arg2[%c0_81, %c0_82] : memref<32x64xf32, #tpu.memory_space<vmem>>, vector<32x64xf32>
      %c0_83 = arith.constant 0 : index
      %c0_84 = arith.constant 0 : index
      %209 = vector.load %arg3[%c0_83, %c0_84] : memref<32x64xf32, #tpu.memory_space<vmem>>, vector<32x64xf32>
      %210 = arith.addf %208, %209 : vector<32x64xf32>
      %c0_85 = arith.constant 0 : index
      %c0_86 = arith.constant 0 : index
      %211 = vector.load %arg17[%c0_85, %c0_86] : memref<32x64xf32, #tpu.memory_space<vmem>>, vector<32x64xf32>
      tpu.vector_store %arg17[%c0_85, %c0_86], %210 {strides = array<i32>} : memref<32x64xf32, #tpu.memory_space<vmem>>, vector<32x64xf32>,
    } else {
    }
    %c0 = arith.constant 0 : index
    %c0_1 = arith.constant 0 : index
    %3 = vector.load %arg17[%c0, %c0_1] : memref<32x64xf32, #tpu.memory_space<vmem>>, vector<32x64xf32>
    %c0_2 = arith.constant 0 : index
    %c0_3 = arith.constant 0 : index
    %c0_4 = arith.constant 0 : index
    %4 = vector.load %arg5[%c0_2, %c0_3, %c0_4] : memref<1x1x64xf32, #tpu.memory_space<vmem>>, vector<1x1x64xf32>
    %5 = vector.shape_cast %4 : vector<1x1x64xf32> to vector<1x64xf32>
    %c0_5 = arith.constant 0 : index
    %c0_6 = arith.constant 0 : index
    %c0_7 = arith.constant 0 : index
    %6 = vector.load %arg6[%c0_5, %c0_6, %c0_7] : memref<1x1x64xf32, #tpu.memory_space<vmem>>, vector<1x1x64xf32>
    %7 = vector.shape_cast %6 : vector<1x1x64xf32> to vector<1x64xf32>
    %cst = arith.constant dense<0.000000e+00> : vector<32xf32>
    %8 = vector.multi_reduction <add>, %3, %cst [1] : vector<32x64xf32> to vector<32xf32>
    %9 = vector.shape_cast %8 : vector<32xf32> to vector<32x1xf32>
    %cst_8 = arith.constant 6.400000e+01 : f32
    %10 = vector.broadcast %cst_8 : f32 to vector<32x1xf32>
    %11 = arith.divf %9, %10 : vector<32x1xf32>
    %12 = vector.broadcast %11 : vector<32x1xf32> to vector<32x64xf32>
    %13 = arith.subf %3, %12 : vector<32x64xf32>
    %14 = arith.mulf %13, %13 : vector<32x64xf32>
    %cst_9 = arith.constant dense<0.000000e+00> : vector<32xf32>
    %15 = vector.multi_reduction <add>, %14, %cst_9 [1] : vector<32x64xf32> to vector<32xf32>
    %16 = vector.shape_cast %15 : vector<32xf32> to vector<32x1xf32>
    %cst_10 = arith.constant 6.400000e+01 : f32
    %17 = vector.broadcast %cst_10 : f32 to vector<32x1xf32>
    %18 = arith.divf %16, %17 : vector<32x1xf32>
    %19 = vector.broadcast %11 : vector<32x1xf32> to vector<32x64xf32>
    %20 = arith.subf %3, %19 : vector<32x64xf32>
    %cst_11 = arith.constant 9.99999974E-6 : f32
    %21 = vector.broadcast %cst_11 : f32 to vector<32x1xf32>
    %22 = arith.addf %18, %21 : vector<32x1xf32>
    %23 = math.rsqrt %22 : vector<32x1xf32>
    %24 = vector.broadcast %23 : vector<32x1xf32> to vector<32x64xf32>
    %25 = arith.mulf %20, %24 : vector<32x64xf32>
    %26 = vector.broadcast %5 : vector<1x64xf32> to vector<32x64xf32>
    %27 = arith.mulf %25, %26 : vector<32x64xf32>
    %28 = vector.broadcast %7 : vector<1x64xf32> to vector<32x64xf32>
    %29 = arith.addf %27, %28 : vector<32x64xf32>
    %30 = arith.truncf %29 : vector<32x64xf32> to vector<32x64xbf16>
    %c0_12 = arith.constant 0 : index
    %c0_13 = arith.constant 0 : index
    %c0_14 = arith.constant 0 : index
    %31 = vector.load %arg7[%c0_12, %c0_13, %c0_14] : memref<1x64x192xbf16, #tpu.memory_space<vmem>>, vector<1x64x192xbf16>
    %32 = vector.shape_cast %31 : vector<1x64x192xbf16> to vector<64x192xbf16>
    %cst_15 = arith.constant dense<0.000000e+00> : vector<32x192xf32>
    %33 = tpu.matmul %30, %32, %cst_15 {dimension_numbers = #tpu.dot_dimension_numbers<[1], [0], [0], [1], [0, 0, 1, 1], [], []>} : vector<32x64xbf16>, vector<64x192xbf16>, vector<32x192xf32> -> vector<32x192xf32>
    %c0_16 = arith.constant 0 : index
    %c0_17 = arith.constant 0 : index
    %c0_18 = arith.constant 0 : index
    %34 = vector.load %arg8[%c0_16, %c0_17, %c0_18] : memref<1x1x192xf32, #tpu.memory_space<vmem>>, vector<1x1x192xf32>
    %35 = vector.shape_cast %34 : vector<1x1x192xf32> to vector<1x192xf32>
    %36 = vector.broadcast %35 : vector<1x192xf32> to vector<32x192xf32>
    %37 = arith.addf %33, %36 : vector<32x192xf32>
    %38 = vector.extract_strided_slice %37 {offsets = [0, 0], sizes = [32, 64], strides = [1, 1]} : vector<32x192xf32> to vector<32x64xf32>
    %cst_19 = arith.constant 2.500000e-01 : f32
    %39 = vector.broadcast %cst_19 : f32 to vector<32x64xf32>
    %40 = arith.mulf %38, %39 : vector<32x64xf32>
    %41 = arith.truncf %40 : vector<32x64xf32> to vector<32x64xbf16>
    %42 = vector.extract_strided_slice %37 {offsets = [0, 64], sizes = [32, 64], strides = [1, 1]} : vector<32x192xf32> to vector<32x64xf32>
    %43 = arith.truncf %42 : vector<32x64xf32> to vector<32x64xbf16>
    %44 = vector.extract_strided_slice %37 {offsets = [0, 128], sizes = [32, 64], strides = [1, 1]} : vector<32x192xf32> to vector<32x64xf32>
    %45 = arith.truncf %44 : vector<32x64xf32> to vector<32x64xbf16>
    %c0_20 = arith.constant 0 : index
    %c0_21 = arith.constant 0 : index
    %46 = vector.load %arg4[%c0_20, %c0_21] : memref<8x8xf32, #tpu.memory_space<vmem>>, vector<8x8xf32>
    %47 = vector.extract_strided_slice %41 {offsets = [0, 0], sizes = [32, 16], strides = [1, 1]} : vector<32x64xbf16> to vector<32x16xbf16>
    %48 = vector.shape_cast %47 : vector<32x16xbf16> to vector<4x8x16xbf16>
    %49 = vector.extract_strided_slice %43 {offsets = [0, 0], sizes = [32, 16], strides = [1, 1]} : vector<32x64xbf16> to vector<32x16xbf16>
    %50 = vector.shape_cast %49 : vector<32x16xbf16> to vector<4x8x16xbf16>
    %51 = vector.extract_strided_slice %45 {offsets = [0, 0], sizes = [32, 16], strides = [1, 1]} : vector<32x64xbf16> to vector<32x16xbf16>
    %52 = vector.shape_cast %51 : vector<32x16xbf16> to vector<4x8x16xbf16>
    "tpu.trace_start"() <{level = 10 : i32, message = "bqd,bkd->bqk"}> : () -> ()
    %cst_22 = arith.constant dense<0.000000e+00> : vector<4x8x8xf32>
    %53 = tpu.matmul %48, %50, %cst_22 {dimension_numbers = #tpu.dot_dimension_numbers<[2], [2], [1], [1], [0, 0, 0, 1, 1, 1], [0], [0]>} : vector<4x8x16xbf16>, vector<4x8x16xbf16>, vector<4x8x8xf32> -> vector<4x8x8xf32>
    "tpu.trace_stop"() : () -> ()
    %54 = vector.shape_cast %46 : vector<8x8xf32> to vector<1x8x8xf32>
    %55 = vector.broadcast %54 : vector<1x8x8xf32> to vector<4x8x8xf32>
    %56 = arith.addf %53, %55 : vector<4x8x8xf32>
    %cst_23 = arith.constant dense<0xFF800000> : vector<4x8xf32>
    %57 = vector.multi_reduction <maximumf>, %56, %cst_23 [2] : vector<4x8x8xf32> to vector<4x8xf32>
    %58 = vector.shape_cast %57 : vector<4x8xf32> to vector<4x8x1xf32>
    %59 = vector.broadcast %58 : vector<4x8x1xf32> to vector<4x8x8xf32>
    %60 = arith.subf %56, %59 : vector<4x8x8xf32>
    %61 = math.exp %60 : vector<4x8x8xf32>
    %cst_24 = arith.constant dense<0.000000e+00> : vector<4x8xf32>
    %62 = vector.multi_reduction <add>, %61, %cst_24 [2] : vector<4x8x8xf32> to vector<4x8xf32>
    %63 = vector.shape_cast %62 : vector<4x8xf32> to vector<4x8x1xf32>
    %64 = tpu.reciprocal %63 {approx = true} : vector<4x8x1xf32> -> vector<4x8x1xf32>
    %65 = vector.broadcast %64 : vector<4x8x1xf32> to vector<4x8x8xf32>
    %66 = arith.mulf %61, %65 : vector<4x8x8xf32>
    %67 = arith.truncf %66 : vector<4x8x8xf32> to vector<4x8x8xbf16>
    "tpu.trace_start"() <{level = 10 : i32, message = "bqk,bkd->bqd"}> : () -> ()
    %cst_25 = arith.constant dense<0.000000e+00> : vector<4x8x16xf32>
    %68 = tpu.matmul %67, %52, %cst_25 {dimension_numbers = #tpu.dot_dimension_numbers<[2], [1], [1], [2], [0, 0, 0, 1, 1, 2], [0], [0]>} : vector<4x8x8xbf16>, vector<4x8x16xbf16>, vector<4x8x16xf32> -> vector<4x8x16xf32>
    "tpu.trace_stop"() : () -> ()
    %69 = vector.shape_cast %68 : vector<4x8x16xf32> to vector<32x16xf32>
    %70 = arith.truncf %69 : vector<32x16xf32> to vector<32x16xbf16>
    %c0_26 = arith.constant 0 : index
    %c0_27 = arith.constant 0 : index
    %71 = vector.load %arg18[%c0_26, %c0_27] : memref<32x64xbf16, #tpu.memory_space<vmem>>, vector<32x16xbf16>
    tpu.vector_store %arg18[%c0_26, %c0_27], %70 {strides = array<i32>} : memref<32x64xbf16, #tpu.memory_space<vmem>>, vector<32x16xbf16>,
    %72 = vector.extract_strided_slice %41 {offsets = [0, 16], sizes = [32, 16], strides = [1, 1]} : vector<32x64xbf16> to vector<32x16xbf16>
    %73 = vector.shape_cast %72 : vector<32x16xbf16> to vector<4x8x16xbf16>
    %74 = vector.extract_strided_slice %43 {offsets = [0, 16], sizes = [32, 16], strides = [1, 1]} : vector<32x64xbf16> to vector<32x16xbf16>
    %75 = vector.shape_cast %74 : vector<32x16xbf16> to vector<4x8x16xbf16>
    %76 = vector.extract_strided_slice %45 {offsets = [0, 16], sizes = [32, 16], strides = [1, 1]} : vector<32x64xbf16> to vector<32x16xbf16>
    %77 = vector.shape_cast %76 : vector<32x16xbf16> to vector<4x8x16xbf16>
    "tpu.trace_start"() <{level = 10 : i32, message = "bqd,bkd->bqk"}> : () -> ()
    %cst_28 = arith.constant dense<0.000000e+00> : vector<4x8x8xf32>
    %78 = tpu.matmul %73, %75, %cst_28 {dimension_numbers = #tpu.dot_dimension_numbers<[2], [2], [1], [1], [0, 0, 0, 1, 1, 1], [0], [0]>} : vector<4x8x16xbf16>, vector<4x8x16xbf16>, vector<4x8x8xf32> -> vector<4x8x8xf32>
    "tpu.trace_stop"() : () -> ()
    %79 = vector.shape_cast %46 : vector<8x8xf32> to vector<1x8x8xf32>
    %80 = vector.broadcast %79 : vector<1x8x8xf32> to vector<4x8x8xf32>
    %81 = arith.addf %78, %80 : vector<4x8x8xf32>
    %cst_29 = arith.constant dense<0xFF800000> : vector<4x8xf32>
    %82 = vector.multi_reduction <maximumf>, %81, %cst_29 [2] : vector<4x8x8xf32> to vector<4x8xf32>
    %83 = vector.shape_cast %82 : vector<4x8xf32> to vector<4x8x1xf32>
    %84 = vector.broadcast %83 : vector<4x8x1xf32> to vector<4x8x8xf32>
    %85 = arith.subf %81, %84 : vector<4x8x8xf32>
    %86 = math.exp %85 : vector<4x8x8xf32>
    %cst_30 = arith.constant dense<0.000000e+00> : vector<4x8xf32>
    %87 = vector.multi_reduction <add>, %86, %cst_30 [2] : vector<4x8x8xf32> to vector<4x8xf32>
    %88 = vector.shape_cast %87 : vector<4x8xf32> to vector<4x8x1xf32>
    %89 = tpu.reciprocal %88 {approx = true} : vector<4x8x1xf32> -> vector<4x8x1xf32>
    %90 = vector.broadcast %89 : vector<4x8x1xf32> to vector<4x8x8xf32>
    %91 = arith.mulf %86, %90 : vector<4x8x8xf32>
    %92 = arith.truncf %91 : vector<4x8x8xf32> to vector<4x8x8xbf16>
    "tpu.trace_start"() <{level = 10 : i32, message = "bqk,bkd->bqd"}> : () -> ()
    %cst_31 = arith.constant dense<0.000000e+00> : vector<4x8x16xf32>
    %93 = tpu.matmul %92, %77, %cst_31 {dimension_numbers = #tpu.dot_dimension_numbers<[2], [1], [1], [2], [0, 0, 0, 1, 1, 2], [0], [0]>} : vector<4x8x8xbf16>, vector<4x8x16xbf16>, vector<4x8x16xf32> -> vector<4x8x16xf32>
    "tpu.trace_stop"() : () -> ()
    %94 = vector.shape_cast %93 : vector<4x8x16xf32> to vector<32x16xf32>
    %95 = arith.truncf %94 : vector<32x16xf32> to vector<32x16xbf16>
    %c0_32 = arith.constant 0 : index
    %c16 = arith.constant 16 : index
    %96 = vector.load %arg18[%c0_32, %c16] : memref<32x64xbf16, #tpu.memory_space<vmem>>, vector<32x16xbf16>
    tpu.vector_store %arg18[%c0_32, %c16], %95 {strides = array<i32>} : memref<32x64xbf16, #tpu.memory_space<vmem>>, vector<32x16xbf16>,
    %97 = vector.extract_strided_slice %41 {offsets = [0, 32], sizes = [32, 16], strides = [1, 1]} : vector<32x64xbf16> to vector<32x16xbf16>
    %98 = vector.shape_cast %97 : vector<32x16xbf16> to vector<4x8x16xbf16>
    %99 = vector.extract_strided_slice %43 {offsets = [0, 32], sizes = [32, 16], strides = [1, 1]} : vector<32x64xbf16> to vector<32x16xbf16>
    %100 = vector.shape_cast %99 : vector<32x16xbf16> to vector<4x8x16xbf16>
    %101 = vector.extract_strided_slice %45 {offsets = [0, 32], sizes = [32, 16], strides = [1, 1]} : vector<32x64xbf16> to vector<32x16xbf16>
    %102 = vector.shape_cast %101 : vector<32x16xbf16> to vector<4x8x16xbf16>
    "tpu.trace_start"() <{level = 10 : i32, message = "bqd,bkd->bqk"}> : () -> ()
    %cst_33 = arith.constant dense<0.000000e+00> : vector<4x8x8xf32>
    %103 = tpu.matmul %98, %100, %cst_33 {dimension_numbers = #tpu.dot_dimension_numbers<[2], [2], [1], [1], [0, 0, 0, 1, 1, 1], [0], [0]>} : vector<4x8x16xbf16>, vector<4x8x16xbf16>, vector<4x8x8xf32> -> vector<4x8x8xf32>
    "tpu.trace_stop"() : () -> ()
    %104 = vector.shape_cast %46 : vector<8x8xf32> to vector<1x8x8xf32>
    %105 = vector.broadcast %104 : vector<1x8x8xf32> to vector<4x8x8xf32>
    %106 = arith.addf %103, %105 : vector<4x8x8xf32>
    %cst_34 = arith.constant dense<0xFF800000> : vector<4x8xf32>
    %107 = vector.multi_reduction <maximumf>, %106, %cst_34 [2] : vector<4x8x8xf32> to vector<4x8xf32>
    %108 = vector.shape_cast %107 : vector<4x8xf32> to vector<4x8x1xf32>
    %109 = vector.broadcast %108 : vector<4x8x1xf32> to vector<4x8x8xf32>
    %110 = arith.subf %106, %109 : vector<4x8x8xf32>
    %111 = math.exp %110 : vector<4x8x8xf32>
    %cst_35 = arith.constant dense<0.000000e+00> : vector<4x8xf32>
    %112 = vector.multi_reduction <add>, %111, %cst_35 [2] : vector<4x8x8xf32> to vector<4x8xf32>
    %113 = vector.shape_cast %112 : vector<4x8xf32> to vector<4x8x1xf32>
    %114 = tpu.reciprocal %113 {approx = true} : vector<4x8x1xf32> -> vector<4x8x1xf32>
    %115 = vector.broadcast %114 : vector<4x8x1xf32> to vector<4x8x8xf32>
    %116 = arith.mulf %111, %115 : vector<4x8x8xf32>
    %117 = arith.truncf %116 : vector<4x8x8xf32> to vector<4x8x8xbf16>
    "tpu.trace_start"() <{level = 10 : i32, message = "bqk,bkd->bqd"}> : () -> ()
    %cst_36 = arith.constant dense<0.000000e+00> : vector<4x8x16xf32>
    %118 = tpu.matmul %117, %102, %cst_36 {dimension_numbers = #tpu.dot_dimension_numbers<[2], [1], [1], [2], [0, 0, 0, 1, 1, 2], [0], [0]>} : vector<4x8x8xbf16>, vector<4x8x16xbf16>, vector<4x8x16xf32> -> vector<4x8x16xf32>
    "tpu.trace_stop"() : () -> ()
    %119 = vector.shape_cast %118 : vector<4x8x16xf32> to vector<32x16xf32>
    %120 = arith.truncf %119 : vector<32x16xf32> to vector<32x16xbf16>
    %c0_37 = arith.constant 0 : index
    %c32 = arith.constant 32 : index
    %121 = vector.load %arg18[%c0_37, %c32] : memref<32x64xbf16, #tpu.memory_space<vmem>>, vector<32x16xbf16>
    tpu.vector_store %arg18[%c0_37, %c32], %120 {strides = array<i32>} : memref<32x64xbf16, #tpu.memory_space<vmem>>, vector<32x16xbf16>,
    %122 = vector.extract_strided_slice %41 {offsets = [0, 48], sizes = [32, 16], strides = [1, 1]} : vector<32x64xbf16> to vector<32x16xbf16>
    %123 = vector.shape_cast %122 : vector<32x16xbf16> to vector<4x8x16xbf16>
    %124 = vector.extract_strided_slice %43 {offsets = [0, 48], sizes = [32, 16], strides = [1, 1]} : vector<32x64xbf16> to vector<32x16xbf16>
    %125 = vector.shape_cast %124 : vector<32x16xbf16> to vector<4x8x16xbf16>
    %126 = vector.extract_strided_slice %45 {offsets = [0, 48], sizes = [32, 16], strides = [1, 1]} : vector<32x64xbf16> to vector<32x16xbf16>
    %127 = vector.shape_cast %126 : vector<32x16xbf16> to vector<4x8x16xbf16>
    "tpu.trace_start"() <{level = 10 : i32, message = "bqd,bkd->bqk"}> : () -> ()
    %cst_38 = arith.constant dense<0.000000e+00> : vector<4x8x8xf32>
    %128 = tpu.matmul %123, %125, %cst_38 {dimension_numbers = #tpu.dot_dimension_numbers<[2], [2], [1], [1], [0, 0, 0, 1, 1, 1], [0], [0]>} : vector<4x8x16xbf16>, vector<4x8x16xbf16>, vector<4x8x8xf32> -> vector<4x8x8xf32>
    "tpu.trace_stop"() : () -> ()
    %129 = vector.shape_cast %46 : vector<8x8xf32> to vector<1x8x8xf32>
    %130 = vector.broadcast %129 : vector<1x8x8xf32> to vector<4x8x8xf32>
    %131 = arith.addf %128, %130 : vector<4x8x8xf32>
    %cst_39 = arith.constant dense<0xFF800000> : vector<4x8xf32>
    %132 = vector.multi_reduction <maximumf>, %131, %cst_39 [2] : vector<4x8x8xf32> to vector<4x8xf32>
    %133 = vector.shape_cast %132 : vector<4x8xf32> to vector<4x8x1xf32>
    %134 = vector.broadcast %133 : vector<4x8x1xf32> to vector<4x8x8xf32>
    %135 = arith.subf %131, %134 : vector<4x8x8xf32>
    %136 = math.exp %135 : vector<4x8x8xf32>
    %cst_40 = arith.constant dense<0.000000e+00> : vector<4x8xf32>
    %137 = vector.multi_reduction <add>, %136, %cst_40 [2] : vector<4x8x8xf32> to vector<4x8xf32>
    %138 = vector.shape_cast %137 : vector<4x8xf32> to vector<4x8x1xf32>
    %139 = tpu.reciprocal %138 {approx = true} : vector<4x8x1xf32> -> vector<4x8x1xf32>
    %140 = vector.broadcast %139 : vector<4x8x1xf32> to vector<4x8x8xf32>
    %141 = arith.mulf %136, %140 : vector<4x8x8xf32>
    %142 = arith.truncf %141 : vector<4x8x8xf32> to vector<4x8x8xbf16>
    "tpu.trace_start"() <{level = 10 : i32, message = "bqk,bkd->bqd"}> : () -> ()
    %cst_41 = arith.constant dense<0.000000e+00> : vector<4x8x16xf32>
    %143 = tpu.matmul %142, %127, %cst_41 {dimension_numbers = #tpu.dot_dimension_numbers<[2], [1], [1], [2], [0, 0, 0, 1, 1, 2], [0], [0]>} : vector<4x8x8xbf16>, vector<4x8x16xbf16>, vector<4x8x16xf32> -> vector<4x8x16xf32>
    "tpu.trace_stop"() : () -> ()
    %144 = vector.shape_cast %143 : vector<4x8x16xf32> to vector<32x16xf32>
    %145 = arith.truncf %144 : vector<32x16xf32> to vector<32x16xbf16>
    %c0_42 = arith.constant 0 : index
    %c48 = arith.constant 48 : index
    %146 = vector.load %arg18[%c0_42, %c48] : memref<32x64xbf16, #tpu.memory_space<vmem>>, vector<32x16xbf16>
    tpu.vector_store %arg18[%c0_42, %c48], %145 {strides = array<i32>} : memref<32x64xbf16, #tpu.memory_space<vmem>>, vector<32x16xbf16>,
    %c0_43 = arith.constant 0 : index
    %c0_44 = arith.constant 0 : index
    %147 = vector.load %arg18[%c0_43, %c0_44] : memref<32x64xbf16, #tpu.memory_space<vmem>>, vector<32x64xbf16>
    %c0_45 = arith.constant 0 : index
    %c0_46 = arith.constant 0 : index
    %c0_47 = arith.constant 0 : index
    %148 = vector.load %arg9[%c0_45, %c0_46, %c0_47] : memref<1x64x64xbf16, #tpu.memory_space<vmem>>, vector<1x64x64xbf16>
    %149 = vector.shape_cast %148 : vector<1x64x64xbf16> to vector<64x64xbf16>
    %cst_48 = arith.constant dense<0.000000e+00> : vector<32x64xf32>
    %150 = tpu.matmul %147, %149, %cst_48 {dimension_numbers = #tpu.dot_dimension_numbers<[1], [0], [0], [1], [0, 0, 1, 1], [], []>} : vector<32x64xbf16>, vector<64x64xbf16>, vector<32x64xf32> -> vector<32x64xf32>
    %c0_49 = arith.constant 0 : index
    %c0_50 = arith.constant 0 : index
    %c0_51 = arith.constant 0 : index
    %151 = vector.load %arg10[%c0_49, %c0_50, %c0_51] : memref<1x1x64xf32, #tpu.memory_space<vmem>>, vector<1x1x64xf32>
    %152 = vector.shape_cast %151 : vector<1x1x64xf32> to vector<1x64xf32>
    %153 = vector.broadcast %152 : vector<1x64xf32> to vector<32x64xf32>
    %154 = arith.addf %150, %153 : vector<32x64xf32>
    %155 = arith.addf %3, %154 : vector<32x64xf32>
    %c0_52 = arith.constant 0 : index
    %c0_53 = arith.constant 0 : index
    %c0_54 = arith.constant 0 : index
    %156 = vector.load %arg11[%c0_52, %c0_53, %c0_54] : memref<1x1x64xf32, #tpu.memory_space<vmem>>, vector<1x1x64xf32>
    %157 = vector.shape_cast %156 : vector<1x1x64xf32> to vector<1x64xf32>
    %c0_55 = arith.constant 0 : index
    %c0_56 = arith.constant 0 : index
    %c0_57 = arith.constant 0 : index
    %158 = vector.load %arg12[%c0_55, %c0_56, %c0_57] : memref<1x1x64xf32, #tpu.memory_space<vmem>>, vector<1x1x64xf32>
    %159 = vector.shape_cast %158 : vector<1x1x64xf32> to vector<1x64xf32>
    %cst_58 = arith.constant dense<0.000000e+00> : vector<32xf32>
    %160 = vector.multi_reduction <add>, %155, %cst_58 [1] : vector<32x64xf32> to vector<32xf32>
    %161 = vector.shape_cast %160 : vector<32xf32> to vector<32x1xf32>
    %cst_59 = arith.constant 6.400000e+01 : f32
    %162 = vector.broadcast %cst_59 : f32 to vector<32x1xf32>
    %163 = arith.divf %161, %162 : vector<32x1xf32>
    %164 = vector.broadcast %163 : vector<32x1xf32> to vector<32x64xf32>
    %165 = arith.subf %155, %164 : vector<32x64xf32>
    %166 = arith.mulf %165, %165 : vector<32x64xf32>
    %cst_60 = arith.constant dense<0.000000e+00> : vector<32xf32>
    %167 = vector.multi_reduction <add>, %166, %cst_60 [1] : vector<32x64xf32> to vector<32xf32>
    %168 = vector.shape_cast %167 : vector<32xf32> to vector<32x1xf32>
    %cst_61 = arith.constant 6.400000e+01 : f32
    %169 = vector.broadcast %cst_61 : f32 to vector<32x1xf32>
    %170 = arith.divf %168, %169 : vector<32x1xf32>
    %171 = vector.broadcast %163 : vector<32x1xf32> to vector<32x64xf32>
    %172 = arith.subf %155, %171 : vector<32x64xf32>
    %cst_62 = arith.constant 9.99999974E-6 : f32
    %173 = vector.broadcast %cst_62 : f32 to vector<32x1xf32>
    %174 = arith.addf %170, %173 : vector<32x1xf32>
    %175 = math.rsqrt %174 : vector<32x1xf32>
    %176 = vector.broadcast %175 : vector<32x1xf32> to vector<32x64xf32>
    %177 = arith.mulf %172, %176 : vector<32x64xf32>
    %178 = vector.broadcast %157 : vector<1x64xf32> to vector<32x64xf32>
    %179 = arith.mulf %177, %178 : vector<32x64xf32>
    %180 = vector.broadcast %159 : vector<1x64xf32> to vector<32x64xf32>
    %181 = arith.addf %179, %180 : vector<32x64xf32>
    %182 = arith.truncf %181 : vector<32x64xf32> to vector<32x64xbf16>
    %c0_63 = arith.constant 0 : index
    %c0_64 = arith.constant 0 : index
    %c0_65 = arith.constant 0 : index
    %183 = vector.load %arg13[%c0_63, %c0_64, %c0_65] : memref<1x64x256xbf16, #tpu.memory_space<vmem>>, vector<1x64x256xbf16>
    %184 = vector.shape_cast %183 : vector<1x64x256xbf16> to vector<64x256xbf16>
    %cst_66 = arith.constant dense<0.000000e+00> : vector<32x256xf32>
    %185 = tpu.matmul %182, %184, %cst_66 {dimension_numbers = #tpu.dot_dimension_numbers<[1], [0], [0], [1], [0, 0, 1, 1], [], []>} : vector<32x64xbf16>, vector<64x256xbf16>, vector<32x256xf32> -> vector<32x256xf32>
    %c0_67 = arith.constant 0 : index
    %c0_68 = arith.constant 0 : index
    %c0_69 = arith.constant 0 : index
    %186 = vector.load %arg14[%c0_67, %c0_68, %c0_69] : memref<1x1x256xf32, #tpu.memory_space<vmem>>, vector<1x1x256xf32>
    %187 = vector.shape_cast %186 : vector<1x1x256xf32> to vector<1x256xf32>
    %188 = vector.broadcast %187 : vector<1x256xf32> to vector<32x256xf32>
    %189 = arith.addf %185, %188 : vector<32x256xf32>
    %cst_70 = arith.constant 1.702000e+00 : f32
    %190 = vector.broadcast %cst_70 : f32 to vector<32x256xf32>
    %191 = arith.mulf %190, %189 : vector<32x256xf32>
    %192 = arith.negf %191 : vector<32x256xf32>
    %193 = math.exp %192 : vector<32x256xf32>
    %cst_71 = arith.constant 1.000000e+00 : f32
    %194 = vector.broadcast %cst_71 : f32 to vector<32x256xf32>
    %195 = arith.addf %194, %193 : vector<32x256xf32>
    %196 = arith.divf %194, %195 : vector<32x256xf32>
    %197 = arith.mulf %189, %196 : vector<32x256xf32>
    %198 = arith.truncf %197 : vector<32x256xf32> to vector<32x256xbf16>
    %c0_72 = arith.constant 0 : index
    %c0_73 = arith.constant 0 : index
    %c0_74 = arith.constant 0 : index
    %199 = vector.load %arg15[%c0_72, %c0_73, %c0_74] : memref<1x256x64xbf16, #tpu.memory_space<vmem>>, vector<1x256x64xbf16>
    %200 = vector.shape_cast %199 : vector<1x256x64xbf16> to vector<256x64xbf16>
    %cst_75 = arith.constant dense<0.000000e+00> : vector<32x64xf32>
    %201 = tpu.matmul %198, %200, %cst_75 {dimension_numbers = #tpu.dot_dimension_numbers<[1], [0], [0], [1], [0, 0, 1, 1], [], []>} : vector<32x256xbf16>, vector<256x64xbf16>, vector<32x64xf32> -> vector<32x64xf32>
    %c0_76 = arith.constant 0 : index
    %c0_77 = arith.constant 0 : index
    %c0_78 = arith.constant 0 : index
    %202 = vector.load %arg16[%c0_76, %c0_77, %c0_78] : memref<1x1x64xf32, #tpu.memory_space<vmem>>, vector<1x1x64xf32>
    %203 = vector.shape_cast %202 : vector<1x1x64xf32> to vector<1x64xf32>
    %204 = vector.broadcast %203 : vector<1x64xf32> to vector<32x64xf32>
    %205 = arith.addf %201, %204 : vector<32x64xf32>
    %206 = arith.addf %155, %205 : vector<32x64xf32>
    %c0_79 = arith.constant 0 : index
    %c0_80 = arith.constant 0 : index
    %207 = vector.load %arg17[%c0_79, %c0_80] : memref<32x64xf32, #tpu.memory_space<vmem>>, vector<32x64xf32>
    tpu.vector_store %arg17[%c0_79, %c0_80], %206 {strides = array<i32>} : memref<32x64xf32, #tpu.memory_space<vmem>>, vector<32x64xf32>,
    return
  }
  func.func @transform_0(%arg0: i32, %arg1: i32) -> (i32, i32) {
    %c0_i32 = arith.constant 0 : i32
    %c0_i32_0 = arith.constant 0 : i32
    return %arg0, %c0_i32 : i32, i32
  }
  func.func @transform_1(%arg0: i32, %arg1: i32) -> (i32, i32) {
    %c0_i32 = arith.constant 0 : i32
    %c0_i32_0 = arith.constant 0 : i32
    %c0_i32_1 = arith.constant 0 : i32
    return %c0_i32, %c0_i32_0 : i32, i32
  }
  func.func @transform_2(%arg0: i32, %arg1: i32) -> (i32, i32) {
    %c0_i32 = arith.constant 0 : i32
    %c0_i32_0 = arith.constant 0 : i32
    %c0_i32_1 = arith.constant 0 : i32
    return %c0_i32, %c0_i32_0 : i32, i32
  }
  func.func @transform_3(%arg0: i32, %arg1: i32) -> (i32, i32, i32) {
    %c0_i32 = arith.constant 0 : i32
    %c0_i32_0 = arith.constant 0 : i32
    %c0_i32_1 = arith.constant 0 : i32
    return %arg1, %c0_i32, %c0_i32_0 : i32, i32, i32
  }
  func.func @transform_4(%arg0: i32, %arg1: i32) -> (i32, i32, i32) {
    %c0_i32 = arith.constant 0 : i32
    %c0_i32_0 = arith.constant 0 : i32
    %c0_i32_1 = arith.constant 0 : i32
    return %arg1, %c0_i32, %c0_i32_0 : i32, i32, i32
  }
  func.func @transform_5(%arg0: i32, %arg1: i32) -> (i32, i32, i32) {
    %c0_i32 = arith.constant 0 : i32
    %c0_i32_0 = arith.constant 0 : i32
    %c0_i32_1 = arith.constant 0 : i32
    return %arg1, %c0_i32, %c0_i32_0 : i32, i32, i32
  }
  func.func @transform_6(%arg0: i32, %arg1: i32) -> (i32, i32, i32) {
    %c0_i32 = arith.constant 0 : i32
    %c0_i32_0 = arith.constant 0 : i32
    %c0_i32_1 = arith.constant 0 : i32
    return %arg1, %c0_i32, %c0_i32_0 : i32, i32, i32
  }
  func.func @transform_7(%arg0: i32, %arg1: i32) -> (i32, i32, i32) {
    %c0_i32 = arith.constant 0 : i32
    %c0_i32_0 = arith.constant 0 : i32
    %c0_i32_1 = arith.constant 0 : i32
    return %arg1, %c0_i32, %c0_i32_0 : i32, i32, i32
  }
  func.func @transform_8(%arg0: i32, %arg1: i32) -> (i32, i32, i32) {
    %c0_i32 = arith.constant 0 : i32
    %c0_i32_0 = arith.constant 0 : i32
    %c0_i32_1 = arith.constant 0 : i32
    return %arg1, %c0_i32, %c0_i32_0 : i32, i32, i32
  }
  func.func @transform_9(%arg0: i32, %arg1: i32) -> (i32, i32, i32) {
    %c0_i32 = arith.constant 0 : i32
    %c0_i32_0 = arith.constant 0 : i32
    %c0_i32_1 = arith.constant 0 : i32
    return %arg1, %c0_i32, %c0_i32_0 : i32, i32, i32
  }
  func.func @transform_10(%arg0: i32, %arg1: i32) -> (i32, i32, i32) {
    %c0_i32 = arith.constant 0 : i32
    %c0_i32_0 = arith.constant 0 : i32
    %c0_i32_1 = arith.constant 0 : i32
    return %arg1, %c0_i32, %c0_i32_0 : i32, i32, i32
  }
  func.func @transform_11(%arg0: i32, %arg1: i32) -> (i32, i32, i32) {
    %c0_i32 = arith.constant 0 : i32
    %c0_i32_0 = arith.constant 0 : i32
    %c0_i32_1 = arith.constant 0 : i32
    return %arg1, %c0_i32, %c0_i32_0 : i32, i32, i32
  }
  func.func @transform_12(%arg0: i32, %arg1: i32) -> (i32, i32, i32) {
    %c0_i32 = arith.constant 0 : i32
    %c0_i32_0 = arith.constant 0 : i32
    %c0_i32_1 = arith.constant 0 : i32
    return %arg1, %c0_i32, %c0_i32_0 : i32, i32, i32
  }
  func.func @transform_13(%arg0: i32, %arg1: i32) -> (i32, i32, i32) {
    %c0_i32 = arith.constant 0 : i32
    %c0_i32_0 = arith.constant 0 : i32
    %c0_i32_1 = arith.constant 0 : i32
    return %arg1, %c0_i32, %c0_i32_0 : i32, i32, i32
  }
  func.func @transform_14(%arg0: i32, %arg1: i32) -> (i32, i32, i32) {
    %c0_i32 = arith.constant 0 : i32
    %c0_i32_0 = arith.constant 0 : i32
    %c0_i32_1 = arith.constant 0 : i32
    return %arg1, %c0_i32, %c0_i32_0 : i32, i32, i32
  }
  func.func @transform_15(%arg0: i32, %arg1: i32) -> (i32, i32) {
    %c0_i32 = arith.constant 0 : i32
    %c0_i32_0 = arith.constant 0 : i32
    return %arg0, %c0_i32 : i32, i32
  }
}

</mosaic_0001>

<bundles_post_ra>
// kernel: tpu_custom_call.1
= control target key start
LH: loop header
LB: loop body
LE: loop exit
PB: predicated region body
PF: predicated region fallthrough
CT: control target
= control target key end

     0   :  { %s5459_s0 = inlined_call_operand.vmem [shape: f32[64,64], index: 0, kind: input, shape index: {}]   ;;  %s5460_s1 = inlined_call_operand.vmem [shape: f32[32,64], index: 1, kind: input, shape index: {}]   ;;  %s5461_s2 = inlined_call_operand.hbm [shape: f32[8,8], index: 2, kind: input, shape index: {}]   ;;  %s5462_s3 = inlined_call_operand.hbm [shape: f32[3,1,64], index: 3, kind: input, shape index: {}]   ;;  %s5463_s4 = inlined_call_operand.vmem [shape: f32[3,1,64], index: 4, kind: input, shape index: {}]   ;;  %s5464_s5 = inlined_call_operand.vmem [shape: bf16[3,64,192], index: 5, kind: input, shape index: {}]   ;;  %s5465_s6 = inlined_call_operand.vmem [shape: f32[3,1,192], index: 6, kind: input, shape index: {}]   ;;  %s5466_s7 = inlined_call_operand.vmem [shape: bf16[3,64,64], index: 7, kind: input, shape index: {}]   ;;  %s5467_s8 = inlined_call_operand.vmem [shape: f32[3,1,64], index: 8, kind: input, shape index: {}]   ;;  %s5468_s9 = inlined_call_operand.vmem [shape: f32[3,1,64], index: 9, kind: input, shape index: {}]   ;;  %s5469_s10 = inlined_call_operand.vmem [shape: f32[3,1,64], index: 10, kind: input, shape index: {}]   ;;  %s5470_s11 = inlined_call_operand.vmem [shape: bf16[3,64,256], index: 11, kind: input, shape index: {}]   ;;  %s5471_s12 = inlined_call_operand.vmem [shape: f32[3,1,256], index: 12, kind: input, shape index: {}]   ;;  %s5472_s13 = inlined_call_operand.vmem [shape: bf16[3,256,64], index: 13, kind: input, shape index: {}]   ;;  %s5473_s14 = inlined_call_operand.vmem [shape: f32[3,1,64], index: 14, kind: input, shape index: {}]   ;;  %s5474_s15 = inlined_call_operand.hbm [shape: f32[64,64], index: 15, kind: output, shape index: {}]  }
   0x1   :  { %5498 = sst [smem:[#allocation27_spill]] %s5459_s0 }
   0x2   :  { %5499 = sst [smem:[#allocation28_spill]] %s5460_s1 }
   0x3   :  { %5500 = sst [smem:[#allocation29_spill]] %s5461_s2 }
   0x4   :  { %5501 = sst [smem:[#allocation30_spill]] %s5462_s3 }
   0x5   :  { %5502 = sst [smem:[#allocation31_spill]] %s5464_s5 }
   0x6   :  { %5503 = sst [smem:[#allocation32_spill]] %s5465_s6 }
   0x7   :  { %5504 = sst [smem:[#allocation33_spill]] %s5466_s7 }
   0x8   :  { %5505 = sst [smem:[#allocation34_spill]] %s5467_s8 }
   0x9   :  { %5506 = sst [smem:[#allocation35_spill]] %s5468_s9 }
   0xa   :  { %5507 = sst [smem:[#allocation36_spill]] %s5469_s10 }
   0xb   :  { %5508 = sst [smem:[#allocation37_spill]] %s5470_s11 }
   0xc   :  { %5509 = sst [smem:[#allocation38_spill]] %s5471_s12 }
   0xd   :  { %5510 = sst [smem:[#allocation39_spill]] %s5472_s13 }
   0xe   :  { %5511 = sst [smem:[#allocation40_spill]] %s5473_s14 }
   0xf   :  { %5512 = sst [smem:[#allocation41_spill]] %s5474_s15 }
  0x10   :  { %20 = vsyncpa [#allocation4], 0 }
  0x11   :  { %21 = vsyncpa [#allocation7], 0 }
  0x12   :  { %23 = vsyncpa [#allocation7 + $0x1], 0 }
  0x13   :  { %24 = vsyncpa [#allocation5], 0 }
  0x14   :  { %26 = vsyncpa [#allocation5 + $0x1], 0  ;;  %s4596_s18 = smov 0   ;;  %s4598_s19 = smov 0  }
  0x15   :  { %s4600_s20 = smov 0   ;;  %s4602_s21 = smov 0  }
  0x16   :  { %s4604_s22 = smov 0   ;;  %s4606_s23 = smov 0  }
  0x17   :  { %s4608_s24 = smov 0   ;;  %s4610_s25 = smov 0  }
  0x18   :  { %s4612_s26 = smov 0   ;;  %s4614_s27 = smov 0  }
  0x19   :  { %s4616_s28 = smov 0  }
  0x1a LB: > { %5513 = sst [smem:[#allocation12_spill]] %s4459_s18  ;;  %s3584_s29 = sadd.s32 4294967295, %s4499_s28   ;;  %s4499_s28 = sphi %s4616_s28, %s32_s28   ;;  %s4495_s27 = sphi %s4614_s27, %s5580_s27   ;;  %s4491_s26 = sphi %s4612_s26, %s5579_s26   ;;  %s4487_s25 = sphi %s4610_s25, %s5578_s25   ;;  %s4483_s24 = sphi %s4608_s24, %s5577_s24   ;;  %s4479_s23 = sphi %s4606_s23, %s5576_s23   ;;  %s4475_s22 = sphi %s4604_s22, %s5575_s22   ;;  %s4471_s21 = sphi %s4602_s21, %s5574_s21   ;;  %s4467_s20 = sphi %s4600_s20, %s5573_s20   ;;  %s4463_s19 = sphi %s4598_s19, %s5572_s19   ;;  %s4459_s18 = sphi %s4596_s18, %s5571_s18  }
  0x1b   : > { %5514 = sst [smem:[#allocation13_spill]] %s4463_s19  ;;  %s3585_s30 = sadd.s32 4294967294, %s4499_s28  }
  0x1c   : > { %5515 = sst [smem:[#allocation14_spill]] %s4467_s20  ;;  %p132_p0 = scmp.ne.s32.totalorder %s4475_s22, %s4471_s21 }
  0x1d   : > { %5516 = sst [smem:[#allocation15_spill]] %s4475_s22  ;;  %p4652_p1 = scmp.eq.s32.totalorder %s3584_s29, 0 }
  0x1e   : > { %5517 = sst [smem:[#allocation16_spill]] %s4479_s23  ;;  %p441_p2 = scmp.ne.s32.totalorder %s4467_s20, %s4463_s19 }
  0x1f   : > { %5518 = sst [smem:[#allocation17_spill]] %s4487_s25  ;;  %p4661_p3 = por %p4652_p1, %p132_p0 }
  0x20   : > { %5519 = sst [smem:[#allocation18_spill]] %s4491_s26  ;;  %p442_p4 = scmp.eq.s32.totalorder %s3584_s29, 5 }
  0x21   : > { %5520 = sst [smem:[#allocation19_spill]] %s4495_s27  ;;  %p447_p5 = scmp.ne.s32.totalorder %s4463_s19, %s4459_s18 }
  0x22   : > { %5521 = sst [smem:[#allocation20_spill]] %s4499_s28  ;;  %p448_p6 = scmp.eq.s32.totalorder %s3585_s30, 5 }
  0x23   : > { %s5522_s16 = scalar_select %p4652_p1, 1, 0 }
  0x24   : > { %s5523_s15 = scalar_select %p4661_p3, 1, 0 }
  0x25   : > { %p4667_p7 = por %p442_p4, %p441_p2  ;;  %p3586_p8 = scmp.ge.s32.totalorder %s4499_s28, 1 }
  0x26   : > { %p4672_p9 = por %p448_p6, %p447_p5  ;;  %p455_p10 = scmp.lt.s32.totalorder %s4499_s28, 7 }
  0x27   : > { %s5524_s1 = scalar_select %p4667_p7, 1, 0 }
  0x28   : > { %s5526_s21 = scalar_select %p4672_p9, 1, 0 }
  0x29   : > { %5525 = sst [smem:[#allocation21_spill]] %s5524_s1  ;;  %p4677_p11 = pnand %p3586_p8, %p455_p10 }
  0x2a   : > { %5527 = sst [smem:[#allocation22_spill]] %s5526_s21  ;;  %s4501_s14 = smov [#allocation3]  }
  0x2b   : > { %s5528_s17 = scalar_select %p4677_p11, 1, 0 }
  0x2c   : > { %s471_s13 = sshll.u32 %s4501_s14, 4  ;;  %p4038_p12 = pneg %p4677_p11  ;;  %s472_s13 = int_to_ptr.vmem [resolvable:$true] %s471_s13 }
  0x2d   : > { %s41_s30 = sadd.s32 1, %s4491_s26  ;;  %s5530_s2 = sld [smem:[#allocation29_spill]] }
  0x2e   : > { %p4685_p13 = pnand %p4038_p12, %p4652_p1 }
  0x30   : > { %p4317_p2 = pneg %p4685_p13 }
  0x33   : > { %s4315_s1 = scalar_lea.hbm %s5530_s2, 128 }
  0x34   : > { %p4316_p0 = scmp.ne.s32.totalorder %s5530_s2, %s4315_s1  ;;  %p4322_p6 = scmp.lt.u32.totalorder %s4315_s1, %s5530_s2 }
  0x36   : > { %p4318_p4 = pnand %p4317_p2, %p4316_p0 }
  0x38   : > { %p4319_p5 = pneg %p4318_p4 }
  0x3a   : > { %p4324_p8 = pnand %p4322_p6, %p4319_p5 }
  0x3c   : > { %4327 = shalt.err (!%p4324_p8)
}
  0x3d   : > { %s4328_s9 = scalar_lea.vmem %s472_s13, 128  ;;  %p4336_p7 = scmp.lt.s32.totalorder %s472_s13, %s472_s13 }
  0x3e   : > { %p4329_p10 = scmp.ne.s32.totalorder %s472_s13, %s4328_s9  ;;  %p4337_p3 = scmp.lt.s32.totalorder %s4328_s9, %s4328_s9 }
  0x40   : > { %p4331_p12 = pnand %p4329_p10, %p4317_p2  ;;  %p4338_p1 = por %p4337_p3, %p4336_p7 }
  0x42   : > { %p4332_p9 = pneg %p4331_p12 }
  0x44   : > { %p4339_p11 = pnand %p4338_p1, %p4332_p9 }
  0x46   : > { %4342 = shalt.err (!%p4339_p11)
}
  0x47   : > { %4041 = dma.hbm_to_vmem [thread:$0]  (!%p4685_p13), %s5530_s2, 128, %s472_s13, [#allocation4]  }
  0x48   : > { %p42_p3 = scmp.ge.s32.totalorder %s41_s30, 3  ;;  %s44_s1 = sadd.s32 1, %s4495_s27 }
  0x49   : > { %s119_s9 = sadd.s32 1, %s4479_s23  ;;  %p126_p1 = scmp.ne.s32.totalorder %s4479_s23, %s4475_s22 }
  0x4a   : > { %s5582_s30 = smov (%p42_p3, %s41_s30), 0  ;;  %s5584_s1 = smov (!%p42_p3, %s44_s1), %s4495_s27 }
  0x4b   : > { %5531 = sst [smem:[#allocation23_spill]] %s5582_s30  ;;  %s116_s10 = ssub.s32 %s4491_s26, %s5582_s30 }
  0x4c   : > { %p127_p7 = scmp.eq.s32.totalorder %s4499_s28, 0  ;;  %p46_p9 = scmp.ge.s32.totalorder %s5584_s1, 2 }
  0x4d   : > { %p117_p11 = scmp.eq.s32.totalorder %s116_s10, 0  ;;  %p4051_p13 = scmp.lt.s32.totalorder %s4499_s28, 6 }
  0x4e   : > { %p4716_p0 = por %p127_p7, %p126_p1  ;;  %s5586_s1 = smov (%p46_p9, %s5584_s1), 0 }
  0x4f   : > { %5533 = sst [smem:[#allocation24_spill]] %s5586_s1  ;;  %s428_s21 = ssub.s32 %s4495_s27, %s5586_s1 }
  0x50   : > { %s4724_s13 = scalar_select %p117_p11, %s4479_s23, %s119_s9  }
  0x51   : > { %s491_s29 = sand.u32 1, %s4479_s23   ;;  %p429_p2 = scmp.eq.s32.totalorder %s428_s21, 0 }
  0x52   : > { %5534 = sst [smem:[#allocation25_spill]] %s4724_s13  ;;  %s3589_s14 = sshll.u32 %s4491_s26, 4 }
  0x53   : > { %s5535_s11 = sadd.s32 1, %s4467_s20  ;;  %s5537_s3 = sld [smem:[#allocation30_spill]] }
  0x54   : > { %s4733_s12 = scalar_select %p429_p2, %s4467_s20, %s5535_s11  }
  0x55   : > { %s494_s28 = scalar_lea.vmem [#allocation6], %s491_s29  ;;  %p4744_p4 = pnand %p4051_p13, %p4716_p0 }
  0x56   : > { %5536 = sst [smem:[#allocation26_spill]] %s4733_s12  ;;  %s501_s7 = sshll.u32 %s494_s28, 4  ;;  %s4740_s7 = int_to_ptr.vmem [resolvable:$true] %s501_s7 }
  0x57   : > { %s492_s21 = scalar_lea.sflag [#allocation7], %s491_s29  ;;  %p4345_p6 = pneg %p4744_p4 }
  0x59   : > { %s4738_s30 = scalar_lea.hbm %s5537_s3, %s3589_s14  ;;  %s4348_s14 = scalar_lea.hbm %s5537_s3, 48 }
  0x5a   : > { %s4343_s11 = scalar_lea.hbm %s4738_s30, 16  ;;  %p4349_p12 = scmp.lt.u32.totalorder %s4738_s30, %s5537_s3 }
  0x5b   : > { %p4344_p5 = scmp.ne.s32.totalorder %s4738_s30, %s4343_s11  ;;  %p4350_p3 = scmp.lt.u32.totalorder %s4348_s14, %s4343_s11 }
  0x5c   : > { %p4352_p7 = scmp.lt.u32.totalorder %s4343_s11, %s4738_s30 }
  0x5d   : > { %p4346_p8 = pnand %p4345_p6, %p4344_p5  ;;  %p4351_p1 = por %p4350_p3, %p4349_p12 }
  0x5f   : > { %p4347_p10 = pneg %p4346_p8  ;;  %p4353_p9 = por %p4352_p7, %p4351_p1 }
  0x61   : > { %p4354_p11 = pnand %p4353_p9, %p4347_p10 }
  0x63   : > { %4357 = shalt.err (!%p4354_p11)
}
  0x64   : > { %s4358_s29 = scalar_lea.vmem %s4740_s7, 16  ;;  %s4502_s2 = smov [#allocation6]  }
  0x65   : > { %p4359_p0 = scmp.ne.s32.totalorder %s4740_s7, %s4358_s29  ;;  %s4363_s28 = sshll.u32 %s4502_s2, 4  ;;  %s4364_s28 = int_to_ptr.vmem [resolvable:$false] %s4363_s28 }
  0x66   : > { %s4365_s18 = scalar_lea.vmem %s4364_s28, 32  ;;  %p4366_p5 = scmp.lt.s32.totalorder %s4740_s7, %s4364_s28 }
  0x67   : > { %p4361_p13 = pnand %p4359_p0, %p4345_p6  ;;  %p4367_p8 = scmp.lt.s32.totalorder %s4365_s18, %s4358_s29 }
  0x69   : > { %p4362_p2 = pneg %p4361_p13  ;;  %p4368_p12 = por %p4367_p8, %p4366_p5 }
  0x6b   : > { %p4369_p3 = pnand %p4368_p12, %p4362_p2 }
  0x6d   : > { %4372 = shalt.err (!%p4369_p3)
}
  0x6e   : > { %4045 = dma.hbm_to_vmem [thread:$0]  (!%p4744_p4), %s4738_s30, 16, %s4740_s7, %s492_s21  }
  0x6f   : > { %p5539_p10 = scmp.ne.s32.totalorder %s5528_s17, 0 }
  0x70   : > { %p5540_p6 = scmp.ne.s32.totalorder (!%p5539_p10), %s5522_s16, 0 }
  0x71   : > { %586 = sbr.rel (%p5539_p10) target bundleno = 4547 (0x11c3), region = 80 }
  0x78   : > { %4446 = dma.done.wait (%p5540_p6), [#allocation4], 128  }
  0x79   : > { %4448 = vsyncadd (%p5540_p6), [#allocation4], 4294967168  ;;  %s592_s11 = sand.u32 1, %s4475_s22   ;;  %p5541_p1 = scmp.ne.s32.totalorder %s5523_s15, 0 }
  0x7a   : > { %s593_s14 = scalar_lea.sflag [#allocation7], %s592_s11  ;;  %s4780_s10 = scalar_lea.vmem [#allocation6], %s592_s11 }
  0x7b   : > { %4450 = dma.done.wait (%p5541_p1), %s593_s14, 16  }
  0x7c   : > { %4452 = vsyncadd (%p5541_p1), %s593_s14, 4294967280  ;;  %s5489_s7 = sand.u32 1, %s4463_s19   ;;  %s3593_s17 = sshll.u32 %s4487_s25, 2 }
  0x7d   : > { %s3592_s16 = sshll.u32 %s5489_s7, 5  ;;  %p690_p4 = scmp.lt.s32.totalorder %s3593_s17, 7 }
  0x7e   : > { %p695_p7 = scmp.lt.s32.totalorder %s4483_s24, 2  ;;  %s5542_s0 = sld [smem:[#allocation27_spill]] }
  0x7f   : > { %s5588_s17 = smov (!%p690_p4, %s3593_s17), 7  ;;  %s5543_s5 = sld [smem:[#allocation31_spill]] }
  0x80   : > { %s4792_s30 = scalar_select %p695_p7, %s4483_s24, 2 }
  0x81   : > { %s3594_s15 = sshll.u32 %s5588_s17, 3  ;;  %s5544_s6 = sld [smem:[#allocation32_spill]] }
  0x82   : > { %s3711_s11 = sshll.u32 %s4792_s30, 6  ;;  %s3597_s14 = sshll.u32 %s4792_s30, 1 }
  0x83   : > { %s3712_s13 = sshll.u32 %s4792_s30, 5  ;;  %s5546_s28 = sld [smem:[#allocation33_spill]] }
  0x84   : > { %s693_s29 = scalar_lea.vmem %s5542_s0, %s3594_s15  ;;  %s5547_s3 = sld [smem:[#allocation35_spill]] }
  0x85   : > { %s4806_s1 = scalar_lea.vmem %s5543_s5, %s3711_s11  ;;  %s5548_s20 = sld [smem:[#allocation36_spill]] }
  0x86   : > { %s5549_s19 = sld [smem:[#allocation37_spill]]  ;;  %s5550_s15 = sld [smem:[#allocation38_spill]] }
  0x87   : > { %s4811_s17 = scalar_lea.vmem %s5544_s6, %s3597_s14  ;;  %s3714_s0 = sshll.u32 %s4792_s30, 7 }
  0x88   : > { %s5552_s5 = sld [smem:[#allocation40_spill]]  ;;  %s4851_s12 = scalar_lea.vmem [#allocation8], %s3592_s16 }
  0x89   : > { %s4821_s18 = scalar_lea.vmem %s5546_s28, %s3712_s13  ;;  %s5551_s28 = sld [smem:[#allocation39_spill]] }
  0x8a   : > { %s717_s7 = scalar_lea.vmem %s5547_s3, %s4792_s30  ;;  %p3605_p9 = scmp.ne.s32.totalorder %s4483_s24, 0 }
  0x8b   : > { %s720_s26 = scalar_lea.vmem %s5548_s20, %s4792_s30  ;;  %v744_v0 = vld [vmem:[%s693_s29] sm:$0xff] (!%p3605_p9)  ;;  %vm756_vm0 = vcmask (!%p3605_p9), 523264   ;;  %v745_v2 = vld [vmem:[%s693_s29 + $0x8] sm:$0xff] (!%p3605_p9)  ;;  %v746_v5 = vld [vmem:[%s693_s29 + $0x10] sm:$0xff] (!%p3605_p9) }
  0x8c   : > { %s4834_s25 = scalar_lea.vmem %s5549_s19, %s3711_s11  ;;  %s4839_s8 = scalar_lea.vmem %s5550_s15, %s3597_s14  ;;  %v747_v9 = vld [vmem:[%s693_s29 + $0x18] sm:$0xff] (!%p3605_p9) }
  0x8d   : > { %743 = sbr.rel (%p3605_p9) target bundleno = 152 (0x98), region = 92  ;;  %s5553_s11 = sld [smem:[#allocation28_spill]] (!%p3605_p9) }
  0x8e   : > { %s737_s20 = scalar_lea.vmem %s5552_s5, %s4792_s30 }
  0x8f   : > { %s4845_s22 = scalar_lea.vmem %s5551_s28, %s3714_s0 }
  0x93   : > { %v748_v1 = vld [vmem:[%s5553_s11] sm:$0xff] (!%p3605_p9)  ;;  %v749_v4 = vld [vmem:[%s5553_s11 + $0x8] sm:$0xff] (!%p3605_p9)  ;;  %v750_v6 = vld [vmem:[%s5553_s11 + $0x10] sm:$0xff] (!%p3605_p9) }
  0x94   : > { %v752_v3 = vadd.f32 %v748_v1, %v744_v0  ;;  %v753_v7 = vadd.f32 %v749_v4, %v745_v2  ;;  %v754_v8 = vadd.f32 %v750_v6, %v746_v5  ;;  %v751_v10 = vld [vmem:[%s5553_s11 + $0x18] sm:$0xff] }
  0x95   : > { %v755_v11 = vadd.f32 %v751_v10, %v747_v9 }
  0x96   : > { %757 = vst.msk [vmem:[%s4851_s12] sm:$0xff] %vm756_vm0, %v752_v3  ;;  %758 = vst.msk [vmem:[%s4851_s12 + $0x8] sm:$0xff] %vm756_vm0, %v753_v7 }
  0x97   : > { %759 = vst.msk [vmem:[%s4851_s12 + $0x10] sm:$0xff] %vm756_vm0, %v754_v8  ;;  %760 = vst.msk [vmem:[%s4851_s12 + $0x18] sm:$0xff] %vm756_vm0, %v755_v11 }
  0x98 PF: > { %vm767_vm1 = vcmask 523264   ;;  %v4155_v40 = vld [vmem:[%s4806_s1 + $0x4] ss:$8 sps:$4 sm:$0xff]   ;;  %v4157_v41 = vld [vmem:[%s4806_s1] ss:$8 sps:$4 sm:$0xff]   ;;  %v4503_v48 = vmov 0   ;;  %s5554_s21 = scalar_lea.vmem %s5463_s4, %s4792_s30 }
  0x99   : > { %909 = vmatprep.subr.bf16.mxu0 %v4155_v40  ;;  %v4158_v42 = vld [vmem:[%s4806_s1 + $0x14] ss:$8 sps:$4 sm:$0xff]   ;;  %v4160_v43 = vld [vmem:[%s4806_s1 + $0x10] ss:$8 sps:$4 sm:$0xff]   ;;  %v4161_v44 = vld [vmem:[%s4806_s1 + $0x24] ss:$8 sps:$4 sm:$0xff]   ;;  %941 = vmatprep.mubr.bf16.mxu0 %v4503_v48 }
  0x9a   : > { %910 = vmatpush1.bf16.msra.mxu0 %v4157_v41  ;;  %v4163_v45 = vld [vmem:[%s4806_s1 + $0x20] ss:$8 sps:$4 sm:$0xff]   ;;  %v4164_v46 = vld [vmem:[%s4806_s1 + $0x34] ss:$8 sps:$4 sm:$0xff]   ;;  %v4166_v47 = vld [vmem:[%s4806_s1 + $0x30] ss:$8 sps:$4 sm:$0xff]  }
  0x9b   : > { %911 = vmatprep.subr.bf16.mxu0 %v4158_v42  ;;  %v3606_v63 = vld [vmem:[%s4780_s10] ss:$0 sm:$0xff]  ;;  %vm4505_vm2 = vmmov 0   ;;  %s4506_s10 = smov 64   ;;  %vm1002_vm3 = vcmask 130048   ;;  %vm1248_vm4 = vcmask 1043456  }
  0x9c   : > { %v3607_v4 = vld [vmem:[%s5554_s21] ss:$0 sm:$0xff]  ;;  %vm1196_vm5 = vcmask 64512   ;;  %s4508_s0 = smov 112   ;;  %s4509_s13 = smov 32   ;;  %vm1884_vm6 = vcmask 261248  }
  0x9d   : > { %v761_v12 = vld [vmem:[%s4851_s12] sm:$0xff]  ;;  %v762_v14 = vld [vmem:[%s4851_s12 + $0x8] sm:$0xff]  ;;  %s4510_s2 = smov 96   ;;  %s4511_s28 = smov 16   ;;  %vm2337_vm7 = vcmask 392448   ;;  %vm2790_vm8 = vcmask 523648  }
  0x9e   : > { %v763_v13 = vld [vmem:[%s4851_s12 + $0x10] sm:$0xff]  ;;  %v768_v15 = vsel %vm767_vm1, %v761_v12, 0.0  ;;  %v764_v17 = vld [vmem:[%s4851_s12 + $0x18] sm:$0xff]  ;;  %v771_v18 = vsel %vm767_vm1, %v762_v14, 0.0  ;;  %912 = vmatpush1.bf16.msra.mxu0 %v4160_v43  ;;  %s4512_s23 = smov 80   ;;  %s5555_s5 = sld [smem:[#allocation34_spill]] }
  0x9f   : > { %v774_v16 = vsel %vm767_vm1, %v763_v13, 0.0  ;;  %769 = vadd.xlane.f32.xlu0 %v768_v15  ;;  %v777_v19 = vsel %vm767_vm1, %v764_v17, 0.0  ;;  %913 = vmatprep.subr.bf16.mxu0 %v4161_v44  ;;  %s3362_s9 = sshll.u32 %s4851_s12, 4  ;;  %s5563_s21 = sld [smem:[#allocation41_spill]]  ;;  %s5389_s9 = int_to_ptr.vmem [resolvable:$true] %s3362_s9 }
  0xa0   : > { %775 = vadd.xlane.f32.xlu1 %v774_v16 }
  0xa2   : > { %914 = vmatpush1.bf16.msra.mxu0 %v4163_v45 }
  0xa3   : > { %772 = vadd.xlane.f32.xlu0 %v771_v18  ;;  %915 = vmatprep.subr.bf16.mxu0 %v4164_v46 }
  0xa4   : > { %778 = vadd.xlane.f32.xlu1 %v777_v19  ;;  %s5556_s6 = scalar_lea.vmem %s5555_s5, %s4792_s30  ;;  %s5561_s30 = sld [smem:[#allocation13_spill]] }
  0xa6   : > { %916 = vmatpush1.bf16.msra.mxu0 %v4166_v47 }
 0x12c   : > { %v770_v20 = vpop.xlane.xlu0 %769 }
 0x12d   : > { %v776_v21 = vpop.xlane.xlu1 %775  ;;  %v781_v22 = vmul.f32 0.015625, %v770_v20  ;;  %v4504_v20 = vmov 0.0  }
 0x12e   : > { %v783_v23 = vmul.f32 0.015625, %v776_v21  ;;  %3826 = vmatprep.subr.bf16.mxu0 %v4504_v20  ;;  %3832 = vmatprep.subr.bf16.mxu1 %v4504_v20  ;;  %v851_v21 = vld [vmem:[%s4811_s17] sm:$0x3]  ;;  %s4507_s17 = smov 48  }
 0x12f   : > { %v785_v24 = vsub.f32 %v761_v12, %v781_v22  ;;  %3834 = vmatprep.mubr.msk.bf16.mxu1 %vm4505_vm2, %v4504_v20 }
 0x130   : > { %v4878_v25 = vsub.f32 %v763_v13, %v783_v23  ;;  %v773_v26 = vpop.xlane.xlu0 %772 }
 0x131   : > { %v779_v27 = vpop.xlane.xlu1 %778  ;;  %v782_v28 = vmul.f32 0.015625, %v773_v26  ;;  %v789_v30 = vmul.f32 %v785_v24, %v785_v24 }
 0x132   : > { %v784_v29 = vmul.f32 0.015625, %v779_v27  ;;  %v791_v31 = vmul.f32 %v4878_v25, %v4878_v25 }
 0x133   : > { %v786_v32 = vsub.f32 %v762_v14, %v782_v28  ;;  %v793_v34 = vsel %vm767_vm1, %v789_v30, 0.0 }
 0x134   : > { %v788_v33 = vsub.f32 %v764_v17, %v784_v29  ;;  %794 = vadd.xlane.f32.xlu0 %v793_v34  ;;  %v799_v35 = vsel %vm767_vm1, %v791_v31, 0.0  ;;  %v853_v17 = vlaneseq }
 0x135   : > { %v790_v36 = vmul.f32 %v786_v32, %v786_v32 }
 0x136   : > { %v792_v37 = vmul.f32 %v788_v33, %v788_v33  ;;  %v4905_v18 = vshrl.u32 %v853_v17, 7 }
 0x137   : > { %v796_v38 = vsel %vm767_vm1, %v790_v36, 0.0 }
 0x138   : > { %800 = vadd.xlane.f32.xlu0 %v799_v35  ;;  %797 = vadd.xlane.f32.xlu1 %v796_v38  ;;  %v802_v39 = vsel %vm767_vm1, %v792_v37, 0.0  ;;  %v855_v19 = vsub.s32 0, %v4905_v18  ;;  %v859_v30 = vsub.s32 1, %v4905_v18 }
 0x13a   : > { %v856_v22 = vrot.slane %v851_v21, %v855_v19 }
 0x13c   : > { %803 = vadd.xlane.f32.xlu1 %v802_v39 }
 0x1c1   : > { %v795_v49 = vpop.xlane.xlu0 %794 }
 0x1c2   : > { %v805_v50 = vmul.f32 0.015625, %v795_v49 }
 0x1c4   : > { %v809_v51 = vadd.f32 1e-05, %v805_v50 }
 0x1c5   : > { %v798_v52 = vpop.xlane.xlu1 %797  ;;  %v801_v53 = vpop.xlane.xlu0 %800 }
 0x1c6   : > { %4199 = vrsqrt.f32 %v809_v51  ;;  %v806_v54 = vmul.f32 0.015625, %v798_v52  ;;  %v807_v55 = vmul.f32 0.015625, %v801_v53 }
 0x1c8   : > { %v810_v56 = vadd.f32 1e-05, %v806_v54  ;;  %v811_v57 = vadd.f32 1e-05, %v807_v55 }
 0x1c9   : > { %v804_v58 = vpop.xlane.xlu1 %803 }
 0x1ca   : > { %4201 = vrsqrt.f32 %v810_v56  ;;  %v808_v59 = vmul.f32 0.015625, %v804_v58 }
 0x1cb   : > { %4203 = vrsqrt.f32 %v811_v57 }
 0x1cc   : > { %v812_v60 = vadd.f32 1e-05, %v808_v59 }
 0x1ce   : > { %4205 = vrsqrt.f32 %v812_v60 }
 0x1d0   : > { %v4200_v61 = vpop.eup %4199 }
 0x1d1   : > { %v817_v62 = vmul.f32 %v4200_v61, %v785_v24 }
 0x1d3   : > { %v827_v2 = vmul.f32 %v3606_v63, %v817_v62 }
 0x1d4   : > { %v4202_v0 = vpop.eup %4201 }
 0x1d5   : > { %v818_v1 = vmul.f32 %v4202_v0, %v786_v32  ;;  %v4204_v3 = vpop.eup %4203  ;;  %v837_v9 = vadd.f32 %v3607_v4, %v827_v2  ;;  %v860_v32 = vrot.slane %v851_v21, %v859_v30  ;;  %v4978_v2 = vld [vmem:[#allocation3] sm:$0xff] }
 0x1d6   : > { %v819_v7 = vmul.f32 %v4204_v3, %v4878_v25 }
 0x1d7   : > { %v828_v5 = vmul.f32 %v3606_v63, %v818_v1 }
 0x1d8   : > { %v4206_v6 = vpop.eup %4205  ;;  %v829_v13 = vmul.f32 %v3606_v63, %v819_v7 }
 0x1d9   : > { %v820_v8 = vmul.f32 %v4206_v6, %v788_v33  ;;  %v838_v10 = vadd.f32 %v3607_v4, %v828_v5 }
 0x1da   : > { %v839_v15 = vadd.f32 %v3607_v4, %v829_v13 }
 0x1db   : > { %v841_v11 = vpack.c.bf16 %v838_v10, %v837_v9  ;;  %v830_v12 = vmul.f32 %v3606_v63, %v820_v8 }
 0x1dd   : > { %3616 = vmatmul.mubr.msk.bf16.vlgmr.msra.gmra.mrb[0].mxu0 %vm767_vm1, %v841_v11  ;;  %v840_v14 = vadd.f32 %v3607_v4, %v830_v12 }
 0x1de   : > { %951 = vmatprep.mubr.bf16.mxu0 %v4503_v48 }
 0x1df   : > { %v842_v16 = vpack.c.bf16 %v840_v14, %v839_v15 }
 0x1e5   : > { %3617 = vmatmul.mubr.msk.bf16.gmra.mrb[4].mxu0 %vm767_vm1, %v842_v16 }
 0x1e6   : > { %3828 = vmatprep.mubr.msk.bf16.mxu0 %vm4505_vm2, %v4504_v20 }
 0x2b0   : > { %v943_v23 = vpop.f32.mrb[0].mxu0 }
 0x2b1   : > { %v944_v24 = vadd.f32 %v943_v23, %v856_v22  ;;  %v945_v25 = vpop.f32.mrb[1].mxu0 }
 0x2b2   : > { %v947_v26 = vpop.f32.mrb[2].mxu0  ;;  %v946_v53 = vadd.f32 %v945_v25, %v860_v32 }
 0x2b3   : > { %v4917_v27 = vpack.c.bf16 %v944_v24, %v944_v24  ;;  %v948_v28 = vadd.f32 %v947_v26, %v856_v22  ;;  %v949_v29 = vpop.f32.mrb[3].mxu0  ;;  %v962_v46 = vmul.f32 0.25, %v944_v24 }
 0x2b4   : > { %v950_v56 = vadd.f32 %v949_v29, %v860_v32  ;;  %v4955_v59 = vpack.c.bf16 %v946_v53, %v946_v53 }
 0x2b5   : > { %v4920_v31 = vpack.c.bf16 %v948_v28, %v948_v28  ;;  %1000 = vrot.lane.b32.xlu0 %v4917_v27, %s4506_s10  ;;  %v963_v49 = vmul.f32 0.25, %v948_v28  ;;  %v4940_v50 = vpack.c.bf16 %v962_v46, %v962_v46 }
 0x2b6   : > { %v4958_v61 = vpack.c.bf16 %v950_v56, %v950_v56  ;;  %v1250_v0 = vsel %vm1248_vm4, %v4955_v59, 0 }
 0x2b7   : > { %1050 = vrot.lane.b32.xlu1 %v4920_v31, %s4506_s10  ;;  %v4942_v52 = vpack.c.bf16 %v963_v49, %v963_v49 }
 0x2b8   : > { %v953_v33 = vpop.f32.mrb[4].mxu0  ;;  %v1296_v1 = vsel %vm1248_vm4, %v4958_v61, 0 }
 0x2b9   : > { %v954_v34 = vadd.f32 %v953_v33, %v856_v22  ;;  %v955_v35 = vpop.f32.mrb[5].mxu0 }
 0x2ba   : > { %v4926_v36 = vadd.f32 %v955_v35, %v860_v32  ;;  %v957_v37 = vpop.f32.mrb[6].mxu0 }
 0x2bb   : > { %v4928_v38 = vpack.c.bf16 %v954_v34, %v954_v34  ;;  %v958_v39 = vadd.f32 %v957_v37, %v856_v22  ;;  %v959_v40 = vpop.f32.mrb[7].mxu0  ;;  %v964_v57 = vmul.f32 0.25, %v954_v34 }
 0x2bc   : > { %v4930_v41 = vadd.f32 %v959_v40, %v860_v32 }
 0x2bd   : > { %1099 = vrot.lane.b32.xlu1 %v4928_v38, %s4506_s10  ;;  %v4933_v42 = vpack.c.bf16 %v958_v39, %v958_v39  ;;  %v965_v60 = vmul.f32 0.25, %v958_v39  ;;  %v4960_v62 = vpack.c.bf16 %v964_v57, %v964_v57 }
 0x2bf   : > { %v4962_v63 = vpack.c.bf16 %v965_v60, %v965_v60 }
 0x2c1   : > { %1148 = vrot.lane.b32.xlu1 %v4933_v42, %s4506_s10  ;;  %s5564_s10 = smov %s5563_s21 }
 0x327   : > { %v1001_v43 = vpop.permute.xlu0 %1000 }
 0x328   : > { %v1007_v44 = vsel %vm1002_vm3, %v1001_v43, 0 }
 0x329   : > { %v1051_v45 = vpop.permute.xlu1 %1050  ;;  %3827 = vmatpush3.bf16.xpose.msra.mxu0 %v1007_v44 }
 0x32a   : > { %v1056_v47 = vsel %vm1002_vm3, %v1051_v45, 0  ;;  %3844 = vmatprep.subr.bf16.mxu0 %v4504_v20 }
 0x32b   : > { %3833 = vmatpush3.bf16.xpose.msra.mxu1 %v1056_v47 }
 0x32c   : > { %3838 = vmatprep.subr.bf16.mxu1 %v4504_v20 }
 0x32f   : > { %v1100_v51 = vpop.permute.xlu1 %1099 }
 0x330   : > { %3829 = vmatmul.mubr.msk.bf16.vlgmr.msra.gmra.mrb[8].mxu0 %vm1002_vm3, %v4940_v50  ;;  %v1105_v54 = vsel %vm1002_vm3, %v1100_v51, 0 }
 0x331   : > { %3846 = vmatprep.mubr.msk.bf16.mxu0 %vm4505_vm2, %v4504_v20 }
 0x332   : > { %3835 = vmatmul.mubr.msk.bf16.vlgmr.msra.gmra.mrb[0].mxu1 %vm1002_vm3, %v4942_v52 }
 0x333   : > { %3839 = vmatpush3.bf16.xpose.msra.mxu1 %v1105_v54  ;;  %v1149_v55 = vpop.permute.xlu1 %1148  ;;  %3840 = vmatprep.mubr.msk.bf16.mxu1 %vm4505_vm2, %v4504_v20 }
 0x334   : > { %v1154_v58 = vsel %vm1002_vm3, %v1149_v55, 0  ;;  %3850 = vmatprep.subr.bf16.mxu1 %v4504_v20 }
 0x335   : > { %3845 = vmatpush3.bf16.xpose.msra.mxu0 %v1154_v58 }
 0x336   : > { %3856 = vmatprep.subr.bf16.mxu0 %v4504_v20 }
 0x33a   : > { %3841 = vmatmul.mubr.msk.bf16.vlgmr.msra.gmra.mrb[4].mxu1 %vm1002_vm3, %v4960_v62 }
 0x33b   : > { %3851 = vmatpush3.bf16.msra.mxu1 %v1250_v0  ;;  %3852 = vmatprep.mubr.msk.bf16.mxu1 %vm4505_vm2, %v4504_v20 }
 0x33c   : > { %3847 = vmatmul.mubr.msk.bf16.vlgmr.msra.gmra.mrb[12].mxu0 %vm1002_vm3, %v4962_v63  ;;  %3862 = vmatprep.subr.bf16.mxu1 %v4504_v20 }
 0x33d   : > { %3857 = vmatpush3.bf16.msra.mxu0 %v1296_v1  ;;  %3858 = vmatprep.mubr.msk.bf16.mxu0 %vm4505_vm2, %v4504_v20 }
 0x33e   : > { %3868 = vmatprep.subr.bf16.mxu0 %v4504_v20 }
 0x403   : > { %v1043_v3 = vpop.f32.mrb[8].mxu0 }
 0x404   : > { %v1044_v4 = vadd.f32 %v1043_v3, %v4978_v2  ;;  %v3830_v5 = vpop.f32.mrb[9].mxu0 }
 0x405   : > { %v1046_v6 = vpop.f32.mrb[10].mxu0  ;;  %v1092_v7 = vpop.f32.mrb[0].mxu1  ;;  %v5010_v5 = vpack.c.bf16 %v4926_v36, %v4926_v36 }
 0x406   : > { %v1093_v8 = vadd.f32 %v1092_v7, %v4978_v2  ;;  %v3831_v9 = vpop.f32.mrb[11].mxu0  ;;  %v3836_v10 = vpop.f32.mrb[1].mxu1  ;;  %v1197_v11 = vsel %vm1196_vm5, %v1044_v4, -inf }
 0x407   : > { %v1095_v12 = vpop.f32.mrb[2].mxu1  ;;  %1198 = vmax.xlane.f32.xlu0 %v1197_v11  ;;  %v1342_v11 = vsel %vm1248_vm4, %v5010_v5, 0 }
 0x408   : > { %v3837_v13 = vpop.f32.mrb[3].mxu1  ;;  %v1200_v14 = vsel %vm1196_vm5, %v1093_v8, -inf }
 0x409   : > { %1201 = vmax.xlane.f32.xlu1 %v1200_v14 }
 0x40d   : > { %v1141_v15 = vpop.f32.mrb[4].mxu1 }
 0x40e   : > { %v1142_v16 = vadd.f32 %v1141_v15, %v4978_v2  ;;  %v3842_v17 = vpop.f32.mrb[5].mxu1 }
 0x40f   : > { %v1144_v21 = vpop.f32.mrb[6].mxu1  ;;  %v1190_v22 = vpop.f32.mrb[12].mxu0 }
 0x410   : > { %v1191_v23 = vadd.f32 %v1190_v22, %v4978_v2  ;;  %v3843_v24 = vpop.f32.mrb[7].mxu1  ;;  %v3848_v25 = vpop.f32.mrb[13].mxu0  ;;  %v1203_v26 = vsel %vm1196_vm5, %v1142_v16, -inf }
 0x411   : > { %1204 = vmax.xlane.f32.xlu0 %v1203_v26  ;;  %v1193_v28 = vpop.f32.mrb[14].mxu0 }
 0x412   : > { %v3849_v29 = vpop.f32.mrb[15].mxu0  ;;  %v1206_v32 = vsel %vm1196_vm5, %v1191_v23, -inf }
 0x415   : > { %1207 = vmax.xlane.f32.xlu0 %v1206_v32 }
 0x494   : > { %v1199_v33 = vpop.xlane.xlu0 %1198 }
 0x495   : > { %v1209_v34 = vsub.f32 %v1044_v4, %v1199_v33 }
 0x496   : > { %v1202_v35 = vpop.xlane.xlu1 %1201 }
 0x497   : > { %v1213_v37 = vmul.f32 1.442695, %v1209_v34  ;;  %v1210_v39 = vsub.f32 %v1093_v8, %v1202_v35  ;;  %v5014_v8 = vpack.c.bf16 %v4930_v41, %v4930_v41 }
 0x499   : > { %4207 = vpow2.f32 %v1213_v37  ;;  %v1215_v40 = vmul.f32 1.442695, %v1210_v39  ;;  %v1388_v36 = vsel %vm1248_vm4, %v5014_v8, 0 }
 0x49b   : > { %4209 = vpow2.f32 %v1215_v40 }
 0x49e   : > { %v1205_v43 = vpop.xlane.xlu0 %1204 }
 0x49f   : > { %v1211_v44 = vsub.f32 %v1142_v16, %v1205_v43 }
 0x4a1   : > { %v1217_v45 = vmul.f32 1.442695, %v1211_v44 }
 0x4a2   : > { %v1208_v55 = vpop.xlane.xlu0 %1207 }
 0x4a3   : > { %v4208_v46 = vpop.eup %4207  ;;  %4211 = vpow2.f32 %v1217_v45  ;;  %v1212_v56 = vsub.f32 %v1191_v23, %v1208_v55 }
 0x4a4   : > { %v1221_v47 = vsel %vm1196_vm5, %v4208_v46, 0.0 }
 0x4a5   : > { %v4210_v49 = vpop.eup %4209  ;;  %1222 = vadd.xlane.f32.xlu0 %v1221_v47  ;;  %v1219_v57 = vmul.f32 1.442695, %v1212_v56 }
 0x4a6   : > { %v1224_v51 = vsel %vm1196_vm5, %v4210_v49, 0.0 }
 0x4a7   : > { %1225 = vadd.xlane.f32.xlu1 %v1224_v51  ;;  %4213 = vpow2.f32 %v1219_v57 }
 0x4ad   : > { %v4212_v53 = vpop.eup %4211 }
 0x4ae   : > { %v1227_v54 = vsel %vm1196_vm5, %v4212_v53, 0.0 }
 0x4af   : > { %1228 = vadd.xlane.f32.xlu0 %v1227_v54 }
 0x4b1   : > { %v4214_v58 = vpop.eup %4213 }
 0x4b2   : > { %v1230_v60 = vsel %vm1196_vm5, %v4214_v58, 0.0 }
 0x4b8   : > { %1486 = vrot.lane.b32.xlu1 %v4920_v31, %s4507_s17 }
 0x4bc   : > { %1434 = vrot.lane.b32.xlu1 %v4940_v50, %s4508_s0 }
 0x4c5   : > { %1436 = vrot.lane.b32.xlu0 %v4917_v27, %s4507_s17 }
 0x4c9   : > { %1536 = vrot.lane.b32.xlu0 %v4928_v38, %s4507_s17 }
 0x4cd   : > { %1534 = vrot.lane.b32.xlu0 %v4960_v62, %s4508_s0 }
 0x4e0   : > { %1231 = vadd.xlane.f32.xlu1 %v1230_v60 }
 0x4f1   : > { %1484 = vrot.lane.b32.xlu1 %v4942_v52, %s4508_s0 }
 0x4f5   : > { %1586 = vrot.lane.b32.xlu1 %v4933_v42, %s4507_s17 }
 0x4f9   : > { %1584 = vrot.lane.b32.xlu1 %v4962_v63, %s4508_s0 }
 0x532   : > { %v1223_v0 = vpop.xlane.xlu0 %1222 }
 0x533   : > { %4215 = vrcp.f32 %v1223_v0 }
 0x534   : > { %v1226_v1 = vpop.xlane.xlu1 %1225 }
 0x535   : > { %4217 = vrcp.f32 %v1226_v1 }
 0x538   : > { %v1487_v17 = vpop.permute.xlu1 %1486 }
 0x539   : > { %v1492_v33 = vsel %vm1002_vm3, %v1487_v17, 0 }
 0x53c   : > { %v1229_v3 = vpop.xlane.xlu0 %1228  ;;  %v1435_v22 = vpop.permute.xlu1 %1434 }
 0x53d   : > { %v4216_v4 = vpop.eup %4215  ;;  %4219 = vrcp.f32 %v1229_v3 }
 0x53e   : > { %v1237_v6 = vmul.f32 %v4216_v4, %v4208_v46 }
 0x53f   : > { %v4218_v7 = vpop.eup %4217 }
 0x540   : > { %v1238_v9 = vmul.f32 %v4218_v7, %v4210_v49  ;;  %v1241_v10 = vpack.c.bf16 %v1237_v6, %v1237_v6  ;;  %v1437_v14 = vpop.permute.xlu0 %1436 }
 0x541   : > { %v1442_v16 = vsel %vm1002_vm3, %v1437_v14, 0 }
 0x542   : > { %3853 = vmatmul.mubr.msk.bf16.vlgmr.msra.gmra.mrb[8].mxu1 %vm1196_vm5, %v1241_v10  ;;  %v1242_v12 = vpack.c.bf16 %v1238_v9, %v1238_v9 }
 0x543   : > { %3863 = vmatpush3.bf16.msra.mxu1 %v1342_v11  ;;  %3864 = vmatprep.mubr.msk.bf16.mxu1 %vm4505_vm2, %v4504_v20 }
 0x544   : > { %3859 = vmatmul.mubr.msk.bf16.vlgmr.msra.gmra.mrb[16].mxu0 %vm1196_vm5, %v1242_v12  ;;  %3874 = vmatprep.subr.bf16.mxu1 %v4504_v20  ;;  %v1537_v21 = vpop.permute.xlu0 %1536 }
 0x545   : > { %3869 = vmatpush3.bf16.msra.mxu0 %v1388_v36  ;;  %3870 = vmatprep.mubr.msk.bf16.mxu0 %vm4505_vm2, %v4504_v20  ;;  %v1542_v23 = vsel %vm1002_vm3, %v1537_v21, 0 }
 0x546   : > { %3880 = vmatprep.subr.bf16.mxu0 %v4504_v20 }
 0x547   : > { %v4220_v41 = vpop.eup %4219 }
 0x548   : > { %v1239_v13 = vmul.f32 %v4220_v41, %v4212_v53  ;;  %v1535_v24 = vpop.permute.xlu0 %1534 }
 0x54a   : > { %v1243_v15 = vpack.c.bf16 %v1239_v13, %v1239_v13 }
 0x54c   : > { %3865 = vmatmul.mubr.msk.bf16.vlgmr.msra.gmra.mrb[12].mxu1 %vm1196_vm5, %v1243_v15 }
 0x54d   : > { %3875 = vmatpush3.bf16.xpose.msra.mxu1 %v1442_v16  ;;  %3876 = vmatprep.mubr.msk.bf16.mxu1 %vm4505_vm2, %v4504_v20 }
 0x54e   : > { %3886 = vmatprep.subr.bf16.mxu1 %v4504_v20 }
 0x554   : > { %3877 = vmatmul.mubr.msk.bf16.vlgmr.msra.gmra.mrb[16].mxu1 %vm1002_vm3, %v1435_v22 }
 0x555   : > { %3887 = vmatpush3.bf16.xpose.msra.mxu1 %v1542_v23  ;;  %3888 = vmatprep.mubr.msk.bf16.mxu1 %vm4505_vm2, %v4504_v20 }
 0x556   : > { %3898 = vmatprep.subr.bf16.mxu1 %v4504_v20 }
 0x55c   : > { %3889 = vmatmul.mubr.msk.bf16.vlgmr.msra.gmra.mrb[20].mxu1 %vm1002_vm3, %v1535_v24 }
 0x55d   : > { %3900 = vmatprep.mubr.msk.bf16.mxu1 %vm4505_vm2, %v4504_v20 }
 0x56d   : > { %v1232_v25 = vpop.xlane.xlu1 %1231 }
 0x56e   : > { %4221 = vrcp.f32 %v1232_v25 }
 0x571   : > { %v1485_v32 = vpop.permute.xlu1 %1484 }
 0x575   : > { %v1587_v34 = vpop.permute.xlu1 %1586 }
 0x576   : > { %v1592_v35 = vsel %vm1002_vm3, %v1587_v34, 0 }
 0x578   : > { %v4222_v26 = vpop.eup %4221 }
 0x579   : > { %v1240_v28 = vmul.f32 %v4222_v26, %v4214_v58  ;;  %v1585_v37 = vpop.permute.xlu1 %1584 }
 0x57b   : > { %v1244_v29 = vpack.c.bf16 %v1240_v28, %v1240_v28 }
 0x57d   : > { %3871 = vmatmul.mubr.msk.bf16.vlgmr.msra.gmra.mrb[20].mxu0 %vm1196_vm5, %v1244_v29 }
 0x57e   : > { %3881 = vmatpush3.bf16.xpose.msra.mxu0 %v1492_v33  ;;  %3882 = vmatprep.mubr.msk.bf16.mxu0 %vm4505_vm2, %v4504_v20 }
 0x57f   : > { %3892 = vmatprep.subr.bf16.mxu0 %v4504_v20 }
 0x585   : > { %3883 = vmatmul.mubr.msk.bf16.vlgmr.msra.gmra.mrb[24].mxu0 %vm1002_vm3, %v1485_v32 }
 0x586   : > { %3893 = vmatpush3.bf16.xpose.msra.mxu0 %v1592_v35  ;;  %3894 = vmatprep.mubr.msk.bf16.mxu0 %vm4505_vm2, %v4504_v20 }
 0x587   : > { %3904 = vmatprep.subr.bf16.mxu0 %v4504_v20 }
 0x58d   : > { %3895 = vmatmul.mubr.msk.bf16.vlgmr.msra.gmra.mrb[28].mxu0 %vm1002_vm3, %v1585_v37 }
 0x58e   : > { %3906 = vmatprep.mubr.msk.bf16.mxu0 %vm4505_vm2, %v4504_v20 }
 0x615   : > { %v1286_v39 = vpop.f32.mrb[8].mxu1 }
 0x616   : > { %v3854_v40 = vpop.f32.mrb[9].mxu1 }
 0x617   : > { %v1289_v43 = vpop.f32.mrb[10].mxu1  ;;  %v1332_v44 = vpop.f32.mrb[16].mxu0 }
 0x618   : > { %v1430_v45 = vpack.c.bf16 %v1332_v44, %v1286_v39  ;;  %v3855_v46 = vpop.f32.mrb[11].mxu1  ;;  %v3860_v47 = vpop.f32.mrb[17].mxu0 }
 0x619   : > { %v1335_v49 = vpop.f32.mrb[18].mxu0 }
 0x61a   : > { %1432 = vst.msk [vmem:[#allocation2] sm:$0xff] %vm1002_vm3, %v1430_v45  ;;  %v3861_v51 = vpop.f32.mrb[19].mxu0 }
 0x61f   : > { %v1378_v53 = vpop.f32.mrb[12].mxu1 }
 0x620   : > { %v3866_v54 = vpop.f32.mrb[13].mxu1 }
 0x621   : > { %v1381_v55 = vpop.f32.mrb[14].mxu1 }
 0x622   : > { %v3867_v56 = vpop.f32.mrb[15].mxu1 }
 0x627   : > { %v1478_v57 = vpop.f32.mrb[16].mxu1 }
 0x628   : > { %v1479_v58 = vadd.f32 %v1478_v57, %v4978_v2  ;;  %v3878_v60 = vpop.f32.mrb[17].mxu1 }
 0x629   : > { %v1481_v0 = vpop.f32.mrb[18].mxu1 }
 0x62a   : > { %v3879_v1 = vpop.f32.mrb[19].mxu1  ;;  %v1634_v3 = vsel %vm1196_vm5, %v1479_v58, -inf }
 0x62b   : > { %1635 = vmax.xlane.f32.xlu0 %v1634_v3 }
 0x62f   : > { %v1578_v4 = vpop.f32.mrb[20].mxu1 }
 0x630   : > { %v1579_v6 = vadd.f32 %v1578_v4, %v4978_v2  ;;  %v3890_v7 = vpop.f32.mrb[21].mxu1 }
 0x631   : > { %v1581_v9 = vpop.f32.mrb[22].mxu1 }
 0x632   : > { %v3891_v10 = vpop.f32.mrb[23].mxu1  ;;  %v1640_v11 = vsel %vm1196_vm5, %v1579_v6, -inf }
 0x633   : > { %1641 = vmax.xlane.f32.xlu0 %v1640_v11 }
 0x650   : > { %v1424_v12 = vpop.f32.mrb[20].mxu0 }
 0x651   : > { %v1431_v36 = vpack.c.bf16 %v1424_v12, %v1378_v53  ;;  %v3872_v41 = vpop.f32.mrb[21].mxu0 }
 0x652   : > { %v1427_v13 = vpop.f32.mrb[22].mxu0 }
 0x653   : > { %1433 = vst.msk [vmem:[#allocation2 + $0x8] sm:$0xff] %vm1002_vm3, %v1431_v36  ;;  %v3873_v14 = vpop.f32.mrb[23].mxu0 }
 0x658   : > { %v1528_v15 = vpop.f32.mrb[24].mxu0 }
 0x659   : > { %v1529_v16 = vadd.f32 %v1528_v15, %v4978_v2  ;;  %v3884_v17 = vpop.f32.mrb[25].mxu0 }
 0x65a   : > { %v1531_v21 = vpop.f32.mrb[26].mxu0 }
 0x65b   : > { %v3885_v22 = vpop.f32.mrb[27].mxu0  ;;  %v1637_v23 = vsel %vm1196_vm5, %v1529_v16, -inf }
 0x65c   : > { %1638 = vmax.xlane.f32.xlu1 %v1637_v23 }
 0x660   : > { %v1628_v24 = vpop.f32.mrb[28].mxu0 }
 0x661   : > { %v1629_v25 = vadd.f32 %v1628_v24, %v4978_v2  ;;  %v3896_v26 = vpop.f32.mrb[29].mxu0 }
 0x662   : > { %v1631_v28 = vpop.f32.mrb[30].mxu0 }
 0x663   : > { %v3897_v29 = vpop.f32.mrb[31].mxu0  ;;  %v1643_v32 = vsel %vm1196_vm5, %v1629_v25, -inf }
 0x664   : > { %1644 = vmax.xlane.f32.xlu0 %v1643_v32 }
 0x66d   : > { %1730 = vrot.lane.b32.xlu1 %v4958_v61, %s4508_s0 }
 0x671   : > { %1778 = vrot.lane.b32.xlu1 %v5010_v5, %s4508_s0 }
 0x675   : > { %1826 = vrot.lane.b32.xlu1 %v5014_v8, %s4508_s0 }
 0x6b8   : > { %v1636_v33 = vpop.xlane.xlu0 %1635 }
 0x6b9   : > { %v1646_v34 = vsub.f32 %v1479_v58, %v1636_v33 }
 0x6bb   : > { %v1650_v35 = vmul.f32 1.442695, %v1646_v34 }
 0x6bd   : > { %4223 = vpow2.f32 %v1650_v35 }
 0x6c0   : > { %v1642_v40 = vpop.xlane.xlu0 %1641 }
 0x6c1   : > { %v1648_v43 = vsub.f32 %v1579_v6, %v1642_v40 }
 0x6c3   : > { %v1654_v46 = vmul.f32 1.442695, %v1648_v43 }
 0x6c7   : > { %v4224_v37 = vpop.eup %4223 }
 0x6c8   : > { %v1658_v39 = vsel %vm1196_vm5, %v4224_v37, 0.0 }
 0x6c9   : > { %1659 = vadd.xlane.f32.xlu0 %v1658_v39 }
 0x6df   : > { %1682 = vrot.lane.b32.xlu0 %v4955_v59, %s4508_s0  ;;  %s5565_s0 = sand.u32 1, %s5561_s30  }
 0x6e9   : > { %v1639_v44 = vpop.xlane.xlu1 %1638 }
 0x6ea   : > { %v1647_v45 = vsub.f32 %v1529_v16, %v1639_v44 }
 0x6ec   : > { %v1652_v47 = vmul.f32 1.442695, %v1647_v45 }
 0x6ed   : > { %v1731_v49 = vpop.permute.xlu1 %1730 }
 0x6ee   : > { %4225 = vpow2.f32 %v1652_v47  ;;  %v1736_v51 = vsel %vm1248_vm4, %v1731_v49, 0 }
 0x6ef   : > { %3905 = vmatpush3.bf16.msra.mxu0 %v1736_v51  ;;  %4227 = vpow2.f32 %v1654_v46 }
 0x6f0   : > { %3916 = vmatprep.subr.bf16.mxu0 %v4504_v20 }
 0x6f1   : > { %v1645_v57 = vpop.xlane.xlu0 %1644  ;;  %v1779_v10 = vpop.permute.xlu1 %1778 }
 0x6f2   : > { %v1649_v58 = vsub.f32 %v1629_v25, %v1645_v57  ;;  %v1784_v12 = vsel %vm1248_vm4, %v1779_v10, 0 }
 0x6f4   : > { %v1656_v60 = vmul.f32 1.442695, %v1649_v58 }
 0x6f5   : > { %v1827_v36 = vpop.permute.xlu1 %1826 }
 0x6f6   : > { %4229 = vpow2.f32 %v1656_v60  ;;  %v1832_v22 = vsel %vm1248_vm4, %v1827_v36, 0 }
 0x6f8   : > { %v4226_v53 = vpop.eup %4225 }
 0x6f9   : > { %v1661_v54 = vsel %vm1196_vm5, %v4226_v53, 0.0  ;;  %v4228_v55 = vpop.eup %4227 }
 0x6fa   : > { %1662 = vadd.xlane.f32.xlu1 %v1661_v54  ;;  %v1664_v56 = vsel %vm1196_vm5, %v4228_v55, 0.0 }
 0x6fe   : > { %1665 = vadd.xlane.f32.xlu0 %v1664_v56 }
 0x700   : > { %v4230_v0 = vpop.eup %4229 }
 0x701   : > { %v1667_v1 = vsel %vm1196_vm5, %v4230_v0, 0.0 }
 0x70b   : > { %1939 = vrot.lane.b32.xlu1 %v4920_v31, %s4509_s13 }
 0x714   : > { %1889 = vrot.lane.b32.xlu0 %v4917_v27, %s4509_s13 }
 0x718   : > { %1887 = vrot.lane.b32.xlu0 %v4940_v50, %s4510_s2 }
 0x71c   : > { %1989 = vrot.lane.b32.xlu0 %v4928_v38, %s4509_s13 }
 0x720   : > { %1987 = vrot.lane.b32.xlu0 %v4960_v62, %s4510_s2 }
 0x72f   : > { %1668 = vadd.xlane.f32.xlu1 %v1667_v1 }
 0x740   : > { %1937 = vrot.lane.b32.xlu1 %v4942_v52, %s4510_s2 }
 0x744   : > { %2039 = vrot.lane.b32.xlu1 %v4933_v42, %s4509_s13 }
 0x748   : > { %2037 = vrot.lane.b32.xlu1 %v4962_v63, %s4510_s2 }
 0x756   : > { %v1660_v3 = vpop.xlane.xlu0 %1659 }
 0x757   : > { %4231 = vrcp.f32 %v1660_v3 }
 0x75a   : > { %v1683_v4 = vpop.permute.xlu0 %1682 }
 0x75b   : > { %v1688_v6 = vsel %vm1248_vm4, %v1683_v4, 0 }
 0x75c   : > { %3899 = vmatpush3.bf16.msra.mxu1 %v1688_v6 }
 0x75d   : > { %3910 = vmatprep.subr.bf16.mxu1 %v4504_v20 }
 0x761   : > { %v4232_v7 = vpop.eup %4231 }
 0x762   : > { %v1674_v9 = vmul.f32 %v4232_v7, %v4224_v37 }
 0x764   : > { %v1678_v11 = vpack.c.bf16 %v1674_v9, %v1674_v9 }
 0x766   : > { %3901 = vmatmul.mubr.msk.bf16.vlgmr.msra.gmra.mrb[24].mxu1 %vm1196_vm5, %v1678_v11 }
 0x767   : > { %3911 = vmatpush3.bf16.msra.mxu1 %v1784_v12  ;;  %3912 = vmatprep.mubr.msk.bf16.mxu1 %vm4505_vm2, %v4504_v20 }
 0x768   : > { %3922 = vmatprep.subr.bf16.mxu1 %v4504_v20 }
 0x787   : > { %v1663_v41 = vpop.xlane.xlu1 %1662 }
 0x788   : > { %4233 = vrcp.f32 %v1663_v41 }
 0x78b   : > { %v1666_v13 = vpop.xlane.xlu0 %1665  ;;  %v1940_v33 = vpop.permute.xlu1 %1939 }
 0x78c   : > { %4235 = vrcp.f32 %v1666_v13  ;;  %v1945_v43 = vsel %vm1002_vm3, %v1940_v33, 0 }
 0x78f   : > { %v1890_v16 = vpop.permute.xlu0 %1889 }
 0x790   : > { %v1895_v26 = vsel %vm1002_vm3, %v1890_v16, 0 }
 0x792   : > { %v4234_v14 = vpop.eup %4233 }
 0x793   : > { %v1675_v15 = vmul.f32 %v4234_v14, %v4226_v53  ;;  %v1888_v25 = vpop.permute.xlu0 %1887 }
 0x795   : > { %v1679_v17 = vpack.c.bf16 %v1675_v15, %v1675_v15 }
 0x796   : > { %v4236_v21 = vpop.eup %4235 }
 0x797   : > { %v1676_v23 = vmul.f32 %v4236_v21, %v4228_v55  ;;  %3907 = vmatmul.mubr.msk.bf16.vlgmr.msra.gmra.mrb[32].mxu0 %vm1196_vm5, %v1679_v17  ;;  %v1990_v28 = vpop.permute.xlu0 %1989 }
 0x798   : > { %3917 = vmatpush3.bf16.msra.mxu0 %v1832_v22  ;;  %3918 = vmatprep.mubr.msk.bf16.mxu0 %vm4505_vm2, %v4504_v20  ;;  %v1995_v29 = vsel %vm1002_vm3, %v1990_v28, 0 }
 0x799   : > { %v1680_v24 = vpack.c.bf16 %v1676_v23, %v1676_v23  ;;  %3928 = vmatprep.subr.bf16.mxu0 %v4504_v20 }
 0x79b   : > { %3913 = vmatmul.mubr.msk.bf16.vlgmr.msra.gmra.mrb[28].mxu1 %vm1196_vm5, %v1680_v24  ;;  %v1988_v32 = vpop.permute.xlu0 %1987 }
 0x79c   : > { %3923 = vmatpush3.bf16.xpose.msra.mxu1 %v1895_v26  ;;  %3924 = vmatprep.mubr.msk.bf16.mxu1 %vm4505_vm2, %v4504_v20 }
 0x79d   : > { %3934 = vmatprep.subr.bf16.mxu1 %v4504_v20 }
 0x7a3   : > { %3925 = vmatmul.mubr.msk.bf16.vlgmr.msra.gmra.mrb[32].mxu1 %vm1002_vm3, %v1888_v25 }
 0x7a4   : > { %3935 = vmatpush3.bf16.xpose.msra.mxu1 %v1995_v29  ;;  %3936 = vmatprep.mubr.msk.bf16.mxu1 %vm4505_vm2, %v4504_v20 }
 0x7a5   : > { %3946 = vmatprep.subr.bf16.mxu1 %v4504_v20 }
 0x7ab   : > { %3937 = vmatmul.mubr.msk.bf16.vlgmr.msra.gmra.mrb[36].mxu1 %vm1002_vm3, %v1988_v32 }
 0x7ac   : > { %3948 = vmatprep.mubr.msk.bf16.mxu1 %vm4505_vm2, %v4504_v20 }
 0x7bc   : > { %v1669_v34 = vpop.xlane.xlu1 %1668 }
 0x7bd   : > { %4237 = vrcp.f32 %v1669_v34 }
 0x7c0   : > { %v1938_v40 = vpop.permute.xlu1 %1937 }
 0x7c4   : > { %v2040_v44 = vpop.permute.xlu1 %2039 }
 0x7c5   : > { %v2045_v45 = vsel %vm1002_vm3, %v2040_v44, 0 }
 0x7c7   : > { %v4238_v35 = vpop.eup %4237 }
 0x7c8   : > { %v1677_v37 = vmul.f32 %v4238_v35, %v4230_v0  ;;  %v2038_v46 = vpop.permute.xlu1 %2037 }
 0x7ca   : > { %v1681_v39 = vpack.c.bf16 %v1677_v37, %v1677_v37 }
 0x7cc   : > { %3919 = vmatmul.mubr.msk.bf16.vlgmr.msra.gmra.mrb[36].mxu0 %vm1196_vm5, %v1681_v39 }
 0x7cd   : > { %3929 = vmatpush3.bf16.xpose.msra.mxu0 %v1945_v43  ;;  %3930 = vmatprep.mubr.msk.bf16.mxu0 %vm4505_vm2, %v4504_v20 }
 0x7ce   : > { %3940 = vmatprep.subr.bf16.mxu0 %v4504_v20 }
 0x7d4   : > { %3931 = vmatmul.mubr.msk.bf16.vlgmr.msra.gmra.mrb[40].mxu0 %vm1002_vm3, %v1938_v40 }
 0x7d5   : > { %3941 = vmatpush3.bf16.xpose.msra.mxu0 %v2045_v45  ;;  %3942 = vmatprep.mubr.msk.bf16.mxu0 %vm4505_vm2, %v4504_v20 }
 0x7d6   : > { %3952 = vmatprep.subr.bf16.mxu0 %v4504_v20 }
 0x7dc   : > { %3943 = vmatmul.mubr.msk.bf16.vlgmr.msra.gmra.mrb[44].mxu0 %vm1002_vm3, %v2038_v46 }
 0x7dd   : > { %3954 = vmatprep.mubr.msk.bf16.mxu0 %vm4505_vm2, %v4504_v20 }
 0x839   : > { %v5132_v47 = vpop.f32.mrb[24].mxu1 }
 0x83a   : > { %v3902_v49 = vpop.f32.mrb[25].mxu1 }
 0x83b   : > { %v1727_v51 = vpop.f32.mrb[26].mxu1 }
 0x83c   : > { %v3903_v53 = vpop.f32.mrb[27].mxu1 }
 0x86a   : > { %v5134_v54 = vpop.f32.mrb[32].mxu0 }
 0x86b   : > { %v1874_v55 = vpack.c.bf16 %v5134_v54, %v5132_v47  ;;  %v3908_v56 = vpop.f32.mrb[33].mxu0 }
 0x86c   : > { %v1775_v57 = vpop.f32.mrb[34].mxu0 }
 0x86d   : > { %v3909_v58 = vpop.f32.mrb[35].mxu0 }
 0x86e   : > { %v5138_v60 = vpop.f32.mrb[28].mxu1 }
 0x86f   : > { %v3914_v0 = vpop.f32.mrb[29].mxu1 }
 0x870   : > { %v1823_v1 = vpop.f32.mrb[30].mxu1 }
 0x871   : > { %v3915_v3 = vpop.f32.mrb[31].mxu1 }
 0x876   : > { %v1931_v4 = vpop.f32.mrb[32].mxu1 }
 0x877   : > { %v1932_v6 = vadd.f32 %v1931_v4, %v4978_v2  ;;  %v3926_v7 = vpop.f32.mrb[33].mxu1 }
 0x878   : > { %v1934_v9 = vpop.f32.mrb[34].mxu1 }
 0x879   : > { %v3927_v10 = vpop.f32.mrb[35].mxu1  ;;  %v2087_v11 = vsel %vm1196_vm5, %v1932_v6, -inf }
 0x87a   : > { %2088 = vmax.xlane.f32.xlu0 %v2087_v11 }
 0x87e   : > { %v2031_v12 = vpop.f32.mrb[36].mxu1 }
 0x87f   : > { %v2032_v36 = vadd.f32 %v2031_v12, %v4978_v2  ;;  %v3938_v41 = vpop.f32.mrb[37].mxu1 }
 0x880   : > { %v2034_v13 = vpop.f32.mrb[38].mxu1 }
 0x881   : > { %v3939_v14 = vpop.f32.mrb[39].mxu1  ;;  %v2093_v15 = vsel %vm1196_vm5, %v2032_v36, -inf }
 0x882   : > { %2094 = vmax.xlane.f32.xlu0 %v2093_v15 }
 0x89f   : > { %v5144_v16 = vpop.f32.mrb[36].mxu0 }
 0x8a0   : > { %v1875_v17 = vpack.c.bf16 %v5144_v16, %v5138_v60  ;;  %v3920_v21 = vpop.f32.mrb[37].mxu0 }
 0x8a1   : > { %v1871_v22 = vpop.f32.mrb[38].mxu0 }
 0x8a2   : > { %v3921_v23 = vpop.f32.mrb[39].mxu0 }
 0x8a7   : > { %v1981_v24 = vpop.f32.mrb[40].mxu0 }
 0x8a8   : > { %v1982_v25 = vadd.f32 %v1981_v24, %v4978_v2  ;;  %v3932_v26 = vpop.f32.mrb[41].mxu0 }
 0x8a9   : > { %v1984_v28 = vpop.f32.mrb[42].mxu0 }
 0x8aa   : > { %v3933_v29 = vpop.f32.mrb[43].mxu0  ;;  %v2090_v32 = vsel %vm1196_vm5, %v1982_v25, -inf }
 0x8ab   : > { %2091 = vmax.xlane.f32.xlu1 %v2090_v32 }
 0x8af   : > { %v2081_v33 = vpop.f32.mrb[44].mxu0 }
 0x8b0   : > { %v2082_v34 = vadd.f32 %v2081_v33, %v4978_v2  ;;  %v3944_v35 = vpop.f32.mrb[45].mxu0 }
 0x8b1   : > { %v2084_v37 = vpop.f32.mrb[46].mxu0 }
 0x8b2   : > { %v3945_v39 = vpop.f32.mrb[47].mxu0  ;;  %v2096_v40 = vsel %vm1196_vm5, %v2082_v34, -inf }
 0x8b3   : > { %2097 = vmax.xlane.f32.xlu0 %v2096_v40 }
 0x8bc   : > { %2183 = vrot.lane.b32.xlu1 %v4958_v61, %s4510_s2 }
 0x8c0   : > { %2231 = vrot.lane.b32.xlu1 %v5010_v5, %s4510_s2 }
 0x8c4   : > { %2279 = vrot.lane.b32.xlu1 %v5014_v8, %s4510_s2 }
 0x907   : > { %v2089_v43 = vpop.xlane.xlu0 %2088 }
 0x908   : > { %v2099_v44 = vsub.f32 %v1932_v6, %v2089_v43 }
 0x90a   : > { %v2103_v45 = vmul.f32 1.442695, %v2099_v44 }
 0x90c   : > { %4239 = vpow2.f32 %v2103_v45 }
 0x90f   : > { %v2095_v51 = vpop.xlane.xlu0 %2094 }
 0x910   : > { %v2101_v53 = vsub.f32 %v2032_v36, %v2095_v51 }
 0x912   : > { %v2107_v58 = vmul.f32 1.442695, %v2101_v53 }
 0x916   : > { %v4240_v46 = vpop.eup %4239 }
 0x917   : > { %v2111_v49 = vsel %vm1196_vm5, %v4240_v46, 0.0 }
 0x918   : > { %2112 = vadd.xlane.f32.xlu0 %v2111_v49 }
 0x92e   : > { %2135 = vrot.lane.b32.xlu0 %v4955_v59, %s4510_s2  ;;  %s4373_s2 = scalar_lea.vmem %s5389_s9, 512 }
 0x92f   : > { %p4374_p11 = scmp.ne.s32.totalorder %s5389_s9, %s4373_s2 }
 0x938   : > { %v2092_v56 = vpop.xlane.xlu1 %2091 }
 0x939   : > { %v2100_v57 = vsub.f32 %v1982_v25, %v2092_v56 }
 0x93b   : > { %v2105_v0 = vmul.f32 1.442695, %v2100_v57 }
 0x93c   : > { %v2184_v1 = vpop.permute.xlu1 %2183 }
 0x93d   : > { %4241 = vpow2.f32 %v2105_v0  ;;  %v2189_v3 = vsel %vm1248_vm4, %v2184_v1, 0 }
 0x93e   : > { %3953 = vmatpush3.bf16.msra.mxu0 %v2189_v3  ;;  %4243 = vpow2.f32 %v2107_v58 }
 0x93f   : > { %3964 = vmatprep.subr.bf16.mxu0 %v4504_v20 }
 0x940   : > { %v2098_v10 = vpop.xlane.xlu0 %2097  ;;  %v2232_v13 = vpop.permute.xlu1 %2231 }
 0x941   : > { %v2102_v11 = vsub.f32 %v2082_v34, %v2098_v10 }
 0x943   : > { %v2109_v12 = vmul.f32 1.442695, %v2102_v11 }
 0x945   : > { %4245 = vpow2.f32 %v2109_v12 }
 0x947   : > { %v4242_v4 = vpop.eup %4241 }
 0x948   : > { %v2114_v6 = vsel %vm1196_vm5, %v4242_v4, 0.0  ;;  %v4244_v7 = vpop.eup %4243 }
 0x949   : > { %2115 = vadd.xlane.f32.xlu1 %v2114_v6  ;;  %v2117_v9 = vsel %vm1196_vm5, %v4244_v7, 0.0 }
 0x94d   : > { %2118 = vadd.xlane.f32.xlu0 %v2117_v9 }
 0x94f   : > { %v4246_v36 = vpop.eup %4245 }
 0x95a   : > { %2392 = vrot.lane.b32.xlu1 %v4920_v31, %s4511_s28  ;;  %v2120_v31 = vsel %vm1196_vm5, %v4246_v36, 0.0 }
 0x963   : > { %2342 = vrot.lane.b32.xlu0 %v4917_v27, %s4511_s28 }
 0x967   : > { %2340 = vrot.lane.b32.xlu0 %v4940_v50, %s4512_s23 }
 0x96b   : > { %2442 = vrot.lane.b32.xlu0 %v4928_v38, %s4511_s28 }
 0x96f   : > { %2440 = vrot.lane.b32.xlu0 %v4960_v62, %s4512_s23 }
 0x97e   : > { %2121 = vadd.xlane.f32.xlu1 %v2120_v31 }
 0x98f   : > { %2390 = vrot.lane.b32.xlu1 %v4942_v52, %s4512_s23  ;;  %v2237_v52 = vsel %vm1248_vm4, %v2232_v13, 0 }
 0x993   : > { %2492 = vrot.lane.b32.xlu1 %v4933_v42, %s4511_s28  ;;  %v2280_v42 = vpop.permute.xlu1 %2279 }
 0x994   : > { %v2285_v26 = vsel %vm1248_vm4, %v2280_v42, 0 }
 0x997   : > { %2490 = vrot.lane.b32.xlu1 %v4962_v63, %s4512_s23 }
 0x9a5   : > { %v2113_v27 = vpop.xlane.xlu0 %2112 }
 0x9a6   : > { %4247 = vrcp.f32 %v2113_v27 }
 0x9a9   : > { %v2136_v38 = vpop.permute.xlu0 %2135 }
 0x9aa   : > { %v2141_v50 = vsel %vm1248_vm4, %v2136_v38, 0 }
 0x9ab   : > { %3947 = vmatpush3.bf16.msra.mxu1 %v2141_v50 }
 0x9ac   : > { %3958 = vmatprep.subr.bf16.mxu1 %v4504_v20 }
 0x9b0   : > { %v4248_v62 = vpop.eup %4247 }
 0x9b1   : > { %v2127_v41 = vmul.f32 %v4248_v62, %v4240_v46 }
 0x9b3   : > { %v2131_v14 = vpack.c.bf16 %v2127_v41, %v2127_v41 }
 0x9b5   : > { %3949 = vmatmul.mubr.msk.bf16.vlgmr.msra.gmra.mrb[40].mxu1 %vm1196_vm5, %v2131_v14 }
 0x9b6   : > { %3959 = vmatpush3.bf16.msra.mxu1 %v2237_v52  ;;  %3960 = vmatprep.mubr.msk.bf16.mxu1 %vm4505_vm2, %v4504_v20 }
 0x9b7   : > { %3970 = vmatprep.subr.bf16.mxu1 %v4504_v20 }
 0x9d6   : > { %v2116_v63 = vpop.xlane.xlu1 %2115 }
 0x9d7   : > { %4249 = vrcp.f32 %v2116_v63 }
 0x9da   : > { %v2119_v15 = vpop.xlane.xlu0 %2118  ;;  %v2393_v39 = vpop.permute.xlu1 %2392 }
 0x9db   : > { %4251 = vrcp.f32 %v2119_v15  ;;  %v2398_v49 = vsel %vm1002_vm3, %v2393_v39, 0 }
 0x9de   : > { %v2343_v23 = vpop.permute.xlu0 %2342 }
 0x9df   : > { %v2348_v33 = vsel %vm1002_vm3, %v2343_v23, 0 }
 0x9e1   : > { %v4250_v21 = vpop.eup %4249 }
 0x9e2   : > { %v2128_v22 = vmul.f32 %v4250_v21, %v4242_v4  ;;  %v2341_v32 = vpop.permute.xlu0 %2340 }
 0x9e4   : > { %v2132_v24 = vpack.c.bf16 %v2128_v22, %v2128_v22 }
 0x9e5   : > { %v4252_v25 = vpop.eup %4251 }
 0x9e6   : > { %v2129_v28 = vmul.f32 %v4252_v25, %v4244_v7  ;;  %3955 = vmatmul.mubr.msk.bf16.vlgmr.msra.gmra.mrb[48].mxu0 %vm1196_vm5, %v2132_v24  ;;  %v2443_v34 = vpop.permute.xlu0 %2442 }
 0x9e7   : > { %3965 = vmatpush3.bf16.msra.mxu0 %v2285_v26  ;;  %3966 = vmatprep.mubr.msk.bf16.mxu0 %vm4505_vm2, %v4504_v20  ;;  %v2448_v35 = vsel %vm1002_vm3, %v2443_v34, 0 }
 0x9e8   : > { %v2133_v29 = vpack.c.bf16 %v2129_v28, %v2129_v28  ;;  %3976 = vmatprep.subr.bf16.mxu0 %v4504_v20 }
 0x9ea   : > { %3961 = vmatmul.mubr.msk.bf16.vlgmr.msra.gmra.mrb[44].mxu1 %vm1196_vm5, %v2133_v29  ;;  %v2441_v37 = vpop.permute.xlu0 %2440 }
 0x9eb   : > { %3971 = vmatpush3.bf16.xpose.msra.mxu1 %v2348_v33  ;;  %3972 = vmatprep.mubr.msk.bf16.mxu1 %vm4505_vm2, %v4504_v20 }
 0x9ec   : > { %3982 = vmatprep.subr.bf16.mxu1 %v4504_v20 }
 0x9f2   : > { %3973 = vmatmul.mubr.msk.bf16.vlgmr.msra.gmra.mrb[48].mxu1 %vm1002_vm3, %v2341_v32 }
 0x9f3   : > { %3983 = vmatpush3.bf16.xpose.msra.mxu1 %v2448_v35  ;;  %3984 = vmatprep.mubr.msk.bf16.mxu1 %vm4505_vm2, %v4504_v20 }
 0x9f4   : > { %3994 = vmatprep.subr.bf16.mxu1 %v4504_v20 }
 0x9fa   : > { %3985 = vmatmul.mubr.msk.bf16.vlgmr.msra.gmra.mrb[52].mxu1 %vm1002_vm3, %v2441_v37 }
 0x9fb   : > { %3996 = vmatprep.mubr.msk.bf16.mxu1 %vm4505_vm2, %v4504_v20 }
 0xa0b   : > { %v2122_v40 = vpop.xlane.xlu1 %2121 }
 0xa0c   : > { %4253 = vrcp.f32 %v2122_v40 }
 0xa0f   : > { %v2391_v46 = vpop.permute.xlu1 %2390 }
 0xa13   : > { %v2493_v51 = vpop.permute.xlu1 %2492 }
 0xa14   : > { %v2498_v53 = vsel %vm1002_vm3, %v2493_v51, 0 }
 0xa16   : > { %v4254_v43 = vpop.eup %4253 }
 0xa17   : > { %v2130_v44 = vmul.f32 %v4254_v43, %v4246_v36  ;;  %v2491_v56 = vpop.permute.xlu1 %2490 }
 0xa19   : > { %v2134_v45 = vpack.c.bf16 %v2130_v44, %v2130_v44 }
 0xa1b   : > { %3967 = vmatmul.mubr.msk.bf16.vlgmr.msra.gmra.mrb[52].mxu0 %vm1196_vm5, %v2134_v45 }
 0xa1c   : > { %3977 = vmatpush3.bf16.xpose.msra.mxu0 %v2398_v49  ;;  %3978 = vmatprep.mubr.msk.bf16.mxu0 %vm4505_vm2, %v4504_v20 }
 0xa1d   : > { %3988 = vmatprep.subr.bf16.mxu0 %v4504_v20 }
 0xa23   : > { %3979 = vmatmul.mubr.msk.bf16.vlgmr.msra.gmra.mrb[56].mxu0 %vm1002_vm3, %v2391_v46 }
 0xa24   : > { %3989 = vmatpush3.bf16.xpose.msra.mxu0 %v2498_v53  ;;  %3990 = vmatprep.mubr.msk.bf16.mxu0 %vm4505_vm2, %v4504_v20 }
 0xa25   : > { %4000 = vmatprep.subr.bf16.mxu0 %v4504_v20 }
 0xa2b   : > { %3991 = vmatmul.mubr.msk.bf16.vlgmr.msra.gmra.mrb[60].mxu0 %vm1002_vm3, %v2491_v56 }
 0xa2c   : > { %4002 = vmatprep.mubr.msk.bf16.mxu0 %vm4505_vm2, %v4504_v20 }
 0xa88   : > { %v5220_v57 = vpop.f32.mrb[40].mxu1 }
 0xa89   : > { %v3950_v58 = vpop.f32.mrb[41].mxu1 }
 0xa8a   : > { %v2180_v0 = vpop.f32.mrb[42].mxu1 }
 0xa8b   : > { %v3951_v1 = vpop.f32.mrb[43].mxu1 }
 0xab9   : > { %v2225_v3 = vpop.f32.mrb[48].mxu0 }
 0xaba   : > { %v2327_v4 = vpack.c.bf16 %v2225_v3, %v5220_v57  ;;  %v3956_v6 = vpop.f32.mrb[49].mxu0 }
 0xabb   : > { %v2228_v7 = vpop.f32.mrb[50].mxu0 }
 0xabc   : > { %v3957_v9 = vpop.f32.mrb[51].mxu0 }
 0xabd   : > { %v5223_v10 = vpop.f32.mrb[44].mxu1 }
 0xabe   : > { %v3962_v11 = vpop.f32.mrb[45].mxu1 }
 0xabf   : > { %v2276_v12 = vpop.f32.mrb[46].mxu1 }
 0xac0   : > { %v3963_v36 = vpop.f32.mrb[47].mxu1 }
 0xac5   : > { %v2384_v31 = vpop.f32.mrb[48].mxu1 }
 0xac6   : > { %v2385_v27 = vadd.f32 %v2384_v31, %v4978_v2  ;;  %v3974_v38 = vpop.f32.mrb[49].mxu1 }
 0xac7   : > { %v2387_v50 = vpop.f32.mrb[50].mxu1 }
 0xac8   : > { %v3975_v62 = vpop.f32.mrb[51].mxu1  ;;  %v2540_v41 = vsel %vm1196_vm5, %v2385_v27, -inf }
 0xac9   : > { %2541 = vmax.xlane.f32.xlu0 %v2540_v41 }
 0xacd   : > { %v2484_v13 = vpop.f32.mrb[52].mxu1 }
 0xace   : > { %v2485_v14 = vadd.f32 %v2484_v13, %v4978_v2  ;;  %v3986_v52 = vpop.f32.mrb[53].mxu1 }
 0xacf   : > { %v2487_v42 = vpop.f32.mrb[54].mxu1 }
 0xad0   : > { %v3987_v63 = vpop.f32.mrb[55].mxu1  ;;  %v2546_v15 = vsel %vm1196_vm5, %v2485_v14, -inf }
 0xad1   : > { %2547 = vmax.xlane.f32.xlu0 %v2546_v15 }
 0xaee   : > { %v2321_v21 = vpop.f32.mrb[52].mxu0 }
 0xaef   : > { %v2328_v22 = vpack.c.bf16 %v2321_v21, %v5223_v10  ;;  %v3968_v23 = vpop.f32.mrb[53].mxu0 }
 0xaf0   : > { %v2324_v24 = vpop.f32.mrb[54].mxu0 }
 0xaf1   : > { %v3969_v25 = vpop.f32.mrb[55].mxu0 }
 0xaf6   : > { %v2434_v26 = vpop.f32.mrb[56].mxu0 }
 0xaf7   : > { %v2435_v28 = vadd.f32 %v2434_v26, %v4978_v2  ;;  %v3980_v29 = vpop.f32.mrb[57].mxu0 }
 0xaf8   : > { %v2437_v32 = vpop.f32.mrb[58].mxu0 }
 0xaf9   : > { %v3981_v33 = vpop.f32.mrb[59].mxu0  ;;  %v2543_v34 = vsel %vm1196_vm5, %v2435_v28, -inf }
 0xafa   : > { %2544 = vmax.xlane.f32.xlu1 %v2543_v34 }
 0xafe   : > { %v2534_v35 = vpop.f32.mrb[60].mxu0 }
 0xaff   : > { %v2535_v37 = vadd.f32 %v2534_v35, %v4978_v2  ;;  %v3992_v39 = vpop.f32.mrb[61].mxu0  ;;  %v4167_v35 = vld [vmem:[%s4821_s18] sm:$0xff]  }
 0xb00   : > { %v2537_v40 = vpop.f32.mrb[62].mxu0 }
 0xb01   : > { %v3993_v43 = vpop.f32.mrb[63].mxu0  ;;  %v2549_v44 = vsel %vm1196_vm5, %v2535_v37, -inf }
 0xb02   : > { %2550 = vmax.xlane.f32.xlu0 %v2549_v44 }
 0xb56   : > { %v2542_v45 = vpop.xlane.xlu0 %2541 }
 0xb57   : > { %v2552_v46 = vsub.f32 %v2385_v27, %v2542_v45 }
 0xb59   : > { %v2556_v49 = vmul.f32 1.442695, %v2552_v46 }
 0xb5b   : > { %4255 = vpow2.f32 %v2556_v49 }
 0xb5e   : > { %v2548_v51 = vpop.xlane.xlu0 %2547 }
 0xb5f   : > { %v2554_v53 = vsub.f32 %v2485_v14, %v2548_v51  ;;  %v4169_v51 = vld [vmem:[%s4821_s18 + $0x10] sm:$0xff]  }
 0xb61   : > { %v2560_v56 = vmul.f32 1.442695, %v2554_v53  ;;  %v4170_v53 = vld [vmem:[%s4821_s18 + $0x18] sm:$0xff]  }
 0xb63   : > { %4257 = vpow2.f32 %v2560_v56 }
 0xb65   : > { %v4256_v57 = vpop.eup %4255 }
 0xb66   : > { %v2564_v58 = vsel %vm1196_vm5, %v4256_v57, 0.0 }
 0xb67   : > { %2565 = vadd.xlane.f32.xlu0 %v2564_v58 }
 0xb6d   : > { %v4258_v0 = vpop.eup %4257 }
 0xb6e   : > { %v2570_v2 = vsel %vm1196_vm5, %v4258_v0, 0.0 }
 0xb6f   : > { %2571 = vadd.xlane.f32.xlu0 %v2570_v2 }
 0xb85   : > { %2588 = vrot.lane.b32.xlu0 %v4955_v59, %s4512_s23 }
 0xb87   : > { %v2545_v1 = vpop.xlane.xlu1 %2544 }
 0xb88   : > { %v2553_v3 = vsub.f32 %v2435_v28, %v2545_v1 }
 0xb89   : > { %1878 = vrot.lane.b32.xlu0 %v1874_v55, %s4511_s28 }
 0xb8a   : > { %v2558_v6 = vmul.f32 1.442695, %v2553_v3 }
 0xb8c   : > { %4259 = vpow2.f32 %v2558_v6 }
 0xb8d   : > { %2331 = vrot.lane.b32.xlu0 %v2327_v4, %s4509_s13 }
 0xb8f   : > { %v2551_v59 = vpop.xlane.xlu0 %2550 }
 0xb90   : > { %v2555_v10 = vsub.f32 %v2535_v37, %v2551_v59  ;;  %v4168_v37 = vld [vmem:[%s4821_s18 + $0x8] sm:$0xff]  }
 0xb92   : > { %v2562_v11 = vmul.f32 1.442695, %v2555_v10 }
 0xb94   : > { %4261 = vpow2.f32 %v2562_v11 }
 0xb96   : > { %v4260_v7 = vpop.eup %4259 }
 0xb97   : > { %v2567_v9 = vsel %vm1196_vm5, %v4260_v7, 0.0 }
 0xb98   : > { %2568 = vadd.xlane.f32.xlu1 %v2567_v9  ;;  %v3662_v9 = vld [vmem:[%s5556_s6] ss:$0 sm:$0xff] }
 0xb9e   : > { %v4262_v47 = vpop.eup %4261 }
 0xb9f   : > { %v2573_v54 = vsel %vm1196_vm5, %v4262_v47, 0.0 }
 0xba9   : > { %2636 = vrot.lane.b32.xlu1 %v4958_v61, %s4512_s23 }
 0xbad   : > { %2684 = vrot.lane.b32.xlu1 %v5010_v5, %s4512_s23 }
 0xbd1   : > { %2574 = vadd.xlane.f32.xlu1 %v2573_v54 }
 0xbe2   : > { %2732 = vrot.lane.b32.xlu1 %v5014_v8, %s4512_s23 }
 0xbe6   : > { %1880 = vrot.lane.b32.xlu1 %v1875_v17, %s4511_s28  ;;  %s4513_s28 = smov [#allocation8]  }
 0xbe7   : > { %s4377_s23 = sshll.u32 %s4513_s28, 4  ;;  %s4378_s23 = int_to_ptr.vmem [resolvable:$false] %s4377_s23 }
 0xbe8   : > { %s4379_s18 = scalar_lea.vmem %s4378_s23, 1024  ;;  %p4380_p5 = scmp.lt.s32.totalorder %s5389_s9, %s4378_s23 }
 0xbe9   : > { %p4381_p8 = scmp.lt.s32.totalorder %s4379_s18, %s4373_s2 }
 0xbea   : > { %2333 = vrot.lane.b32.xlu1 %v2328_v22, %s4509_s13  ;;  %s5398_s13 = scalar_lea.sflag [#allocation5], %s5565_s0 }
 0xbeb   : > { %p4382_p12 = por %p4381_p8, %p4380_p5 }
 0xbf4   : > { %v2566_v61 = vpop.xlane.xlu0 %2565 }
 0xbf5   : > { %4263 = vrcp.f32 %v2566_v61 }
 0xbfc   : > { %v2572_v5 = vpop.xlane.xlu0 %2571 }
 0xbfd   : > { %4265 = vrcp.f32 %v2572_v5  ;;  %v4311_v5 = vld [vmem:[%s4851_s12] sm:$0xff] }
 0xbff   : > { %v4264_v55 = vpop.eup %4263 }
 0xc00   : > { %v2580_v4 = vmul.f32 %v4264_v55, %v4256_v57  ;;  %v2589_v12 = vpop.permute.xlu0 %2588 }
 0xc01   : > { %v2594_v36 = vsel %vm1248_vm4, %v2589_v12, 0  ;;  %v4312_v12 = vld [vmem:[%s4851_s12 + $0x10] sm:$0xff] }
 0xc02   : > { %3995 = vmatpush3.bf16.msra.mxu1 %v2594_v36  ;;  %v2584_v31 = vpack.c.bf16 %v2580_v4, %v2580_v4 }
 0xc03   : > { %4006 = vmatprep.subr.bf16.mxu1 %v4504_v20 }
 0xc04   : > { %v1879_v8 = vpop.permute.xlu0 %1878 }
 0xc05   : > { %1885 = vst.msk [vmem:[#allocation2] sm:$0xff] %vm1884_vm6, %v1879_v8  ;;  %3997 = vmatmul.mubr.msk.bf16.vlgmr.msra.gmra.mrb[56].mxu1 %vm1196_vm5, %v2584_v31  ;;  %v4313_v8 = vld [vmem:[%s4851_s12 + $0x8] sm:$0xff] }
 0xc06   : > { %4008 = vmatprep.mubr.msk.bf16.mxu1 %vm4505_vm2, %v4504_v20 }
 0xc07   : > { %v4266_v17 = vpop.eup %4265 }
 0xc08   : > { %v2332_v60 = vpop.permute.xlu0 %2331  ;;  %v2582_v50 = vmul.f32 %v4266_v17, %v4258_v0 }
 0xc09   : > { %2338 = vst.msk [vmem:[#allocation2] sm:$0xff] %vm2337_vm7, %v2332_v60 }
 0xc0a   : > { %v2586_v14 = vpack.c.bf16 %v2582_v50, %v2582_v50 }
 0xc25   : > { %v2569_v16 = vpop.xlane.xlu1 %2568 }
 0xc26   : > { %4267 = vrcp.f32 %v2569_v16 }
 0xc29   : > { %v2637_v27 = vpop.permute.xlu1 %2636 }
 0xc2a   : > { %v2642_v38 = vsel %vm1248_vm4, %v2637_v27, 0  ;;  %v4314_v27 = vld [vmem:[%s4851_s12 + $0x18] sm:$0xff] }
 0xc2b   : > { %4001 = vmatpush3.bf16.msra.mxu0 %v2642_v38 }
 0xc2c   : > { %4012 = vmatprep.subr.bf16.mxu0 %v4504_v20 }
 0xc2d   : > { %v2685_v62 = vpop.permute.xlu1 %2684 }
 0xc2e   : > { %v2690_v41 = vsel %vm1248_vm4, %v2685_v62, 0 }
 0xc2f   : > { %4007 = vmatpush3.bf16.msra.mxu1 %v2690_v41 }
 0xc30   : > { %v4268_v13 = vpop.eup %4267  ;;  %4018 = vmatprep.subr.bf16.mxu1 %v4167_v35 }
 0xc31   : > { %v2581_v52 = vmul.f32 %v4268_v13, %v4260_v7 }
 0xc32   : > { %4009 = vmatmul.mubr.msk.bf16.vlgmr.msra.gmra.mrb[60].mxu1 %vm1196_vm5, %v2586_v14 }
 0xc33   : > { %v2585_v42 = vpack.c.bf16 %v2581_v52, %v2581_v52  ;;  %4019 = vmatpush3.bf16.msra.mxu1 %v4167_v35 }
 0xc34   : > { %4020 = vmatprep.subr.bf16.mxu1 %v4168_v37 }
 0xc35   : > { %4003 = vmatmul.mubr.msk.bf16.vlgmr.msra.gmra.mrb[64].mxu0 %vm1196_vm5, %v2585_v42 }
 0xc36   : > { %4014 = vmatprep.mubr.msk.bf16.mxu0 %vm4505_vm2, %v4504_v20 }
 0xc37   : > { %4021 = vmatpush3.bf16.msra.mxu1 %v4168_v37  ;;  %v4173_v37 = vld [vmem:[%s4834_s25 + $0x4] ss:$8 sps:$4 sm:$0xff]  }
 0xc38   : > { %4022 = vmatprep.subr.bf16.mxu1 %v4169_v51 }
 0xc3b   : > { %4023 = vmatpush3.bf16.msra.mxu1 %v4169_v51 }
 0xc3c   : > { %4024 = vmatprep.subr.bf16.mxu1 %v4170_v53 }
 0xc3f   : > { %4025 = vmatpush3.bf16.msra.mxu1 %v4170_v53 }
 0xc5e   : > { %v2575_v63 = vpop.xlane.xlu1 %2574 }
 0xc5f   : > { %4269 = vrcp.f32 %v2575_v63 }
 0xc62   : > { %v2733_v15 = vpop.permute.xlu1 %2732 }
 0xc63   : > { %v2738_v21 = vsel %vm1248_vm4, %v2733_v15, 0 }
 0xc64   : > { %4013 = vmatpush3.bf16.msra.mxu0 %v2738_v21 }
 0xc65   : > { %3035 = vmatprep.subr.bf16.mxu0 %v4173_v37 }
 0xc66   : > { %v1881_v22 = vpop.permute.xlu1 %1880 }
 0xc67   : > { %1886 = vst.msk [vmem:[#allocation2 + $0x8] sm:$0xff] %vm1884_vm6, %v1881_v22 }
 0xc69   : > { %v4270_v23 = vpop.eup %4269 }
 0xc6a   : > { %v2583_v24 = vmul.f32 %v4270_v23, %v4262_v47  ;;  %v2334_v25 = vpop.permute.xlu1 %2333 }
 0xc6b   : > { %2339 = vst.msk [vmem:[#allocation2 + $0x8] sm:$0xff] %vm2337_vm7, %v2334_v25 }
 0xc6c   : > { %v2587_v26 = vpack.c.bf16 %v2583_v24, %v2583_v24 }
 0xc6e   : > { %4015 = vmatmul.mubr.msk.bf16.vlgmr.msra.gmra.mrb[68].mxu0 %vm1196_vm5, %v2587_v26 }
 0xc6f   : > { %3067 = vmatprep.mubr.bf16.mxu0 %v4503_v48 }
 0xcd8   : > { %v2630_v20 = vpop.f32.mrb[56].mxu1 }
 0xcd9   : > { %v3998_v28 = vpop.f32.mrb[57].mxu1 }
 0xcda   : > { %v2633_v29 = vpop.f32.mrb[58].mxu1 }
 0xcdb   : > { %v3999_v32 = vpop.f32.mrb[59].mxu1 }
 0xd05   : > { %v2726_v33 = vpop.f32.mrb[60].mxu1 }
 0xd06   : > { %v4010_v34 = vpop.f32.mrb[61].mxu1 }
 0xd07   : > { %v2729_v39 = vpop.f32.mrb[62].mxu1 }
 0xd08   : > { %v2678_v40 = vpop.f32.mrb[64].mxu0  ;;  %v4011_v43 = vpop.f32.mrb[63].mxu1  ;;  %v4171_v39 = vld [vmem:[%s4834_s25] ss:$8 sps:$4 sm:$0xff]  }
 0xd09   : > { %v2780_v44 = vpack.c.bf16 %v2678_v40, %v2630_v20  ;;  %v4004_v45 = vpop.f32.mrb[65].mxu0  ;;  %3036 = vmatpush1.bf16.msra.mxu0 %v4171_v39  ;;  %v4176_v40 = vld [vmem:[%s4834_s25 + $0x14] ss:$8 sps:$4 sm:$0xff]   ;;  %v4174_v43 = vld [vmem:[%s4834_s25 + $0x10] ss:$8 sps:$4 sm:$0xff]  }
 0xd0a   : > { %v2681_v46 = vpop.f32.mrb[66].mxu0  ;;  %3037 = vmatprep.subr.bf16.mxu0 %v4176_v40  ;;  %v4177_v45 = vld [vmem:[%s4834_s25 + $0x20] ss:$8 sps:$4 sm:$0xff]  }
 0xd0b   : > { %2784 = vrot.lane.b32.xlu0 %v2780_v44, %s4507_s17  ;;  %v4005_v49 = vpop.f32.mrb[67].mxu0  ;;  %v4179_v44 = vld [vmem:[%s4834_s25 + $0x24] ss:$8 sps:$4 sm:$0xff]   ;;  %v4182_v46 = vld [vmem:[%s4834_s25 + $0x34] ss:$8 sps:$4 sm:$0xff]  }
 0xd0c   : > { %v4180_v49 = vld [vmem:[%s4834_s25 + $0x30] ss:$8 sps:$4 sm:$0xff]  }
 0xd0d   : > { %3038 = vmatpush1.bf16.msra.mxu0 %v4174_v43 }
 0xd0e   : > { %3039 = vmatprep.subr.bf16.mxu0 %v4179_v44 }
 0xd11   : > { %3040 = vmatpush1.bf16.msra.mxu0 %v4177_v45 }
 0xd12   : > { %3041 = vmatprep.subr.bf16.mxu0 %v4182_v46 }
 0xd15   : > { %3042 = vmatpush1.bf16.msra.mxu0 %v4180_v49 }
 0xd41   : > { %v2774_v56 = vpop.f32.mrb[68].mxu0 }
 0xd42   : > { %v2781_v57 = vpack.c.bf16 %v2774_v56, %v2726_v33  ;;  %v4016_v58 = vpop.f32.mrb[69].mxu0 }
 0xd43   : > { %v2777_v0 = vpop.f32.mrb[70].mxu0 }
 0xd44   : > { %2786 = vrot.lane.b32.xlu1 %v2781_v57, %s4507_s17  ;;  %v4017_v2 = vpop.f32.mrb[71].mxu0 }
 0xd7d   : > { %v2785_v1 = vpop.permute.xlu0 %2784 }
 0xd7e   : > { %2791 = vst.msk [vmem:[#allocation2] sm:$0xff] %vm2790_vm8, %v2785_v1 }
 0xd85   : > { %v2793_v3 = vld [vmem:[#allocation2] sm:$0xff] }
 0xd86   : > { %4026 = vmatprep.mubr.msk.bf16.mxu1 %vm767_vm1, %v2793_v3 }
 0xdb6   : > { %v2787_v6 = vpop.permute.xlu1 %2786 }
 0xdb7   : > { %2792 = vst.msk [vmem:[#allocation2 + $0x8] sm:$0xff] %vm2790_vm8, %v2787_v6 }
 0xdbe   : > { %v2794_v7 = vld [vmem:[#allocation2 + $0x8] sm:$0xff] }
 0xdbf   : > { %4027 = vmatmul.mubr.msk.bf16.vlgmr.msra.gmra.mrb[64].mxu1 %vm767_vm1, %v2794_v7 }
 0xe92   : > { %v4028_v59 = vpop.f32.mrb[64].mxu1 }
 0xe93   : > { %v2874_v10 = vpop.f32.mrb[65].mxu1  ;;  %v2883_v11 = vadd.f32 %v4028_v59, %v3662_v9 }
 0xe94   : > { %v2875_v47 = vadd.f32 %v3662_v9, %v2874_v10  ;;  %v4029_v54 = vpop.f32.mrb[66].mxu1  ;;  %v3669_v10 = vld [vmem:[%s717_s7] ss:$0 sm:$0xff] }
 0xe95   : > { %v2877_v61 = vpop.f32.mrb[67].mxu1  ;;  %v5292_v36 = vadd.f32 %v4312_v12, %v2883_v11  ;;  %v2886_v31 = vadd.f32 %v4029_v54, %v3662_v9 }
 0xe96   : > { %v5289_v55 = vadd.f32 %v4311_v5, %v2875_v47  ;;  %v2878_v4 = vadd.f32 %v3662_v9, %v2877_v61 }
 0xe97   : > { %v5302_v38 = vadd.f32 %v4314_v27, %v2886_v31  ;;  %v2901_v50 = vsel %vm767_vm1, %v5292_v36, 0.0 }
 0xe98   : > { %v5295_v60 = vadd.f32 %v4313_v8, %v2878_v4  ;;  %v2895_v16 = vsel %vm767_vm1, %v5289_v55, 0.0  ;;  %v3670_v4 = vld [vmem:[%s720_s26] ss:$0 sm:$0xff] }
 0xe99   : > { %2896 = vadd.xlane.f32.xlu0 %v2895_v16  ;;  %v2904_v62 = vsel %vm767_vm1, %v5302_v38, 0.0 }
 0xe9a   : > { %v2898_v17 = vsel %vm767_vm1, %v5295_v60, 0.0 }
 0xe9b   : > { %2899 = vadd.xlane.f32.xlu1 %v2898_v17 }
 0xe9d   : > { %2902 = vadd.xlane.f32.xlu0 %v2901_v50 }
 0xea1   : > { %2905 = vadd.xlane.f32.xlu0 %v2904_v62 }
 0xf26   : > { %v2897_v41 = vpop.xlane.xlu0 %2896 }
 0xf27   : > { %v2907_v13 = vmul.f32 0.015625, %v2897_v41 }
 0xf28   : > { %v2900_v14 = vpop.xlane.xlu1 %2899 }
 0xf29   : > { %v2911_v52 = vsub.f32 %v5289_v55, %v2907_v13  ;;  %v2908_v42 = vmul.f32 0.015625, %v2900_v14 }
 0xf2a   : > { %v2903_v63 = vpop.xlane.xlu0 %2902 }
 0xf2b   : > { %v2912_v15 = vsub.f32 %v5295_v60, %v2908_v42  ;;  %v2909_v21 = vmul.f32 0.015625, %v2903_v63  ;;  %v2915_v22 = vmul.f32 %v2911_v52, %v2911_v52  ;;  %v4183_v42 = vld [vmem:[%s4845_s22 + $0x40] sm:$0xff]  }
 0xf2c   : > { %v4184_v63 = vld [vmem:[%s4845_s22] sm:$0xff]   ;;  %3798 = vmatprep.subr.bf16.mxu1 %v4183_v42 }
 0xf2d   : > { %v2913_v23 = vsub.f32 %v5292_v36, %v2909_v21  ;;  %v2919_v24 = vsel %vm767_vm1, %v2915_v22, 0.0  ;;  %v2916_v25 = vmul.f32 %v2912_v15, %v2912_v15  ;;  %3799 = vmatpush3.bf16.msra.mxu1 %v4184_v63  ;;  %v4186_v21 = vld [vmem:[%s4845_s22 + $0x8] sm:$0xff]   ;;  %v4188_v22 = vld [vmem:[%s4845_s22 + $0x10] sm:$0xff]  }
 0xf2e   : > { %2920 = vadd.xlane.f32.xlu0 %v2919_v24  ;;  %v2906_v26 = vpop.xlane.xlu0 %2905  ;;  %v4190_v24 = vld [vmem:[%s4845_s22 + $0x18] sm:$0xff]  }
 0xf2f   : > { %v2910_v20 = vmul.f32 0.015625, %v2906_v26  ;;  %v2922_v28 = vsel %vm767_vm1, %v2916_v25, 0.0  ;;  %v2917_v29 = vmul.f32 %v2913_v23, %v2913_v23  ;;  %v4191_v25 = vld [vmem:[%s4845_s22 + $0x60] sm:$0xff]  }
 0xf30   : > { %2923 = vadd.xlane.f32.xlu1 %v2922_v28  ;;  %v4192_v26 = vld [vmem:[%s4845_s22 + $0x20] sm:$0xff]   ;;  %v4194_v28 = vld [vmem:[%s4845_s22 + $0x28] sm:$0xff]  }
 0xf31   : > { %v2914_v32 = vsub.f32 %v5302_v38, %v2910_v20  ;;  %v2925_v33 = vsel %vm767_vm1, %v2917_v29, 0.0  ;;  %v4193_v20 = vld [vmem:[%s4845_s22 + $0x68] sm:$0xff]   ;;  %v4195_v29 = vld [vmem:[%s4845_s22 + $0x70] sm:$0xff]  }
 0xf32   : > { %2926 = vadd.xlane.f32.xlu0 %v2925_v33  ;;  %v4197_v33 = vld [vmem:[%s4845_s22 + $0x78] sm:$0xff]  }
 0xf33   : > { %v2918_v34 = vmul.f32 %v2914_v32, %v2914_v32 }
 0xf35   : > { %v2928_v35 = vsel %vm767_vm1, %v2918_v34, 0.0  ;;  %v4198_v34 = vld [vmem:[%s4845_s22 + $0x38] sm:$0xff]  }
 0xf36   : > { %2929 = vadd.xlane.f32.xlu1 %v2928_v35  ;;  %v2977_v35 = vld [vmem:[%s4839_s8] sm:$0x3] }
 0xf37   : > { %v2982_v37 = vrot.slane %v2977_v35, %v855_v19  ;;  %v2986_v39 = vrot.slane %v2977_v35, %v859_v30 }
 0xfbb   : > { %v2921_v51 = vpop.xlane.xlu0 %2920 }
 0xfbc   : > { %v2931_v53 = vmul.f32 0.015625, %v2921_v51 }
 0xfbd   : > { %v2924_v56 = vpop.xlane.xlu1 %2923 }
 0xfbe   : > { %v2935_v57 = vadd.f32 1e-05, %v2931_v53  ;;  %v2932_v58 = vmul.f32 0.015625, %v2924_v56 }
 0xfbf   : > { %v2927_v0 = vpop.xlane.xlu0 %2926 }
 0xfc0   : > { %4271 = vrsqrt.f32 %v2935_v57  ;;  %v2936_v2 = vadd.f32 1e-05, %v2932_v58  ;;  %v2933_v1 = vmul.f32 0.015625, %v2927_v0 }
 0xfc2   : > { %4273 = vrsqrt.f32 %v2936_v2  ;;  %v2937_v3 = vadd.f32 1e-05, %v2933_v1 }
 0xfc3   : > { %v2930_v6 = vpop.xlane.xlu1 %2929 }
 0xfc4   : > { %4275 = vrsqrt.f32 %v2937_v3  ;;  %v2934_v7 = vmul.f32 0.015625, %v2930_v6 }
 0xfc6   : > { %v2938_v9 = vadd.f32 1e-05, %v2934_v7 }
 0xfc8   : > { %4277 = vrsqrt.f32 %v2938_v9 }
 0xfca   : > { %v4272_v59 = vpop.eup %4271 }
 0xfcb   : > { %v2943_v11 = vmul.f32 %v4272_v59, %v2911_v52 }
 0xfcc   : > { %v4274_v47 = vpop.eup %4273 }
 0xfcd   : > { %v2953_v54 = vmul.f32 %v3669_v10, %v2943_v11  ;;  %v2944_v61 = vmul.f32 %v4274_v47, %v2912_v15  ;;  %v4185_v15 = vld [vmem:[%s4845_s22 + $0x48] sm:$0xff]  }
 0xfce   : > { %v4276_v5 = vpop.eup %4275  ;;  %3800 = vmatprep.subr.bf16.mxu1 %v4185_v15 }
 0xfcf   : > { %v2954_v12 = vmul.f32 %v3669_v10, %v2944_v61  ;;  %v2945_v31 = vmul.f32 %v4276_v5, %v2913_v23  ;;  %v2963_v8 = vadd.f32 %v3670_v4, %v2953_v54  ;;  %3801 = vmatpush3.bf16.msra.mxu1 %v4186_v21  ;;  %v4189_v23 = vld [vmem:[%s4845_s22 + $0x58] sm:$0xff]  }
 0xfd1   : > { %v2964_v16 = vadd.f32 %v3670_v4, %v2954_v12  ;;  %v2955_v62 = vmul.f32 %v3669_v10, %v2945_v31 }
 0xfd2   : > { %v4278_v17 = vpop.eup %4277 }
 0xfd3   : > { %v2946_v27 = vmul.f32 %v4278_v17, %v2914_v32  ;;  %v2967_v50 = vpack.c.bf16 %v2964_v16, %v2963_v8  ;;  %v2965_v14 = vadd.f32 %v3670_v4, %v2955_v62  ;;  %v4196_v32 = vld [vmem:[%s4845_s22 + $0x30] sm:$0xff]  }
 0xfd5   : > { %3679 = vmatmul.mubr.msk.bf16.vlgmr.msra.gmra.mrb[72].mxu0 %vm767_vm1, %v2967_v50  ;;  %v2956_v41 = vmul.f32 %v3669_v10, %v2946_v27 }
 0xfd6   : > { %3077 = vmatprep.mubr.bf16.mxu0 %v4503_v48  ;;  %v4187_v48 = vld [vmem:[%s4845_s22 + $0x50] sm:$0xff]   ;;  %s5560_s22 = sld [smem:[#allocation17_spill]] }
 0xfd7   : > { %v2966_v13 = vadd.f32 %v3670_v4, %v2956_v41  ;;  %3802 = vmatprep.subr.bf16.mxu1 %v4187_v48 }
 0xfd8   : > { %3803 = vmatpush3.bf16.msra.mxu1 %v4188_v22 }
 0xfd9   : > { %v2968_v52 = vpack.c.bf16 %v2966_v13, %v2965_v14  ;;  %3804 = vmatprep.subr.bf16.mxu1 %v4189_v23 }
 0xfdc   : > { %3805 = vmatpush3.bf16.msra.mxu1 %v4190_v24  ;;  %s3727_s27 = sshll.u32 %s5560_s22, 9 }
 0xfdd   : > { %3680 = vmatmul.mubr.msk.bf16.gmra.mrb[76].mxu0 %vm767_vm1, %v2968_v52  ;;  %3806 = vmatprep.subr.bf16.mxu1 %v4191_v25  ;;  %s5387_s17 = scalar_lea.hbm %s5563_s21, %s3727_s27 }
 0xfe0   : > { %3807 = vmatpush3.bf16.msra.mxu1 %v4192_v26 }
 0xfe1   : > { %3808 = vmatprep.subr.bf16.mxu1 %v4193_v20 }
 0xfe4   : > { %3809 = vmatpush3.bf16.msra.mxu1 %v4194_v28 }
 0xfe5   : > { %3810 = vmatprep.subr.bf16.mxu1 %v4195_v29 }
 0xfe8   : > { %3811 = vmatpush3.bf16.msra.mxu1 %v4196_v32 }
 0xfe9   : > { %3812 = vmatprep.subr.bf16.mxu1 %v4197_v33 }
 0xfec   : > { %3813 = vmatpush3.bf16.msra.mxu1 %v4198_v34 }
0x10a8   : > { %v3069_v40 = vpop.f32.mrb[72].mxu0 }
0x10a9   : > { %v5358_v43 = vadd.f32 %v3069_v40, %v2982_v37  ;;  %v3071_v44 = vpop.f32.mrb[73].mxu0 }
0x10aa   : > { %v5360_v45 = vadd.f32 %v3071_v44, %v2986_v39  ;;  %v3073_v46 = vpop.f32.mrb[74].mxu0 }
0x10ab   : > { %v3681_v49 = vmul.f32 -1.702, %v5358_v43  ;;  %v5363_v51 = vadd.f32 %v3073_v46, %v2982_v37  ;;  %v3075_v53 = vpop.f32.mrb[75].mxu0 }
0x10ac   : > { %v3682_v56 = vmul.f32 -1.702, %v5360_v45  ;;  %v3076_v57 = vadd.f32 %v3075_v53, %v2986_v39 }
0x10ad   : > { %v3104_v58 = vmul.f32 1.442695, %v3681_v49  ;;  %v3683_v19 = vmul.f32 -1.702, %v5363_v51 }
0x10ae   : > { %v3106_v18 = vmul.f32 1.442695, %v3682_v56  ;;  %v3684_v30 = vmul.f32 -1.702, %v3076_v57 }
0x10af   : > { %4279 = vpow2.f32 %v3104_v58  ;;  %v3108_v0 = vmul.f32 1.442695, %v3683_v19 }
0x10b0   : > { %4281 = vpow2.f32 %v3106_v18  ;;  %v3110_v2 = vmul.f32 1.442695, %v3684_v30  ;;  %v3079_v1 = vpop.f32.mrb[76].mxu0 }
0x10b1   : > { %4283 = vpow2.f32 %v3108_v0  ;;  %v3080_v3 = vadd.f32 %v3079_v1, %v2982_v37  ;;  %v3081_v6 = vpop.f32.mrb[77].mxu0 }
0x10b2   : > { %4285 = vpow2.f32 %v3110_v2  ;;  %v3082_v7 = vadd.f32 %v3081_v6, %v2986_v39  ;;  %v3083_v9 = vpop.f32.mrb[78].mxu0 }
0x10b3   : > { %v3685_v59 = vmul.f32 -1.702, %v3080_v3  ;;  %v3084_v10 = vadd.f32 %v3083_v9, %v2982_v37  ;;  %v3085_v11 = vpop.f32.mrb[79].mxu0 }
0x10b4   : > { %v3686_v47 = vmul.f32 -1.702, %v3082_v7  ;;  %v3086_v54 = vadd.f32 %v3085_v11, %v2986_v39 }
0x10b5   : > { %v3112_v61 = vmul.f32 1.442695, %v3685_v59  ;;  %v3687_v5 = vmul.f32 -1.702, %v3084_v10 }
0x10b6   : > { %v3114_v4 = vmul.f32 1.442695, %v3686_v47  ;;  %v3688_v12 = vmul.f32 -1.702, %v3086_v54 }
0x10b7   : > { %4287 = vpow2.f32 %v3112_v61  ;;  %v3116_v31 = vmul.f32 1.442695, %v3687_v5 }
0x10b8   : > { %4289 = vpow2.f32 %v3114_v4  ;;  %v3118_v8 = vmul.f32 1.442695, %v3688_v12 }
0x10b9   : > { %v4280_v16 = vpop.eup %4279  ;;  %4291 = vpow2.f32 %v3116_v31 }
0x10ba   : > { %v4282_v17 = vpop.eup %4281  ;;  %v3120_v27 = vadd.f32 1.0, %v4280_v16  ;;  %4293 = vpow2.f32 %v3118_v8 }
0x10bb   : > { %v4284_v50 = vpop.eup %4283  ;;  %v3121_v62 = vadd.f32 1.0, %v4282_v17 }
0x10bc   : > { %v4286_v41 = vpop.eup %4285  ;;  %4295 = vrcp.f32 %v3120_v27  ;;  %v3122_v13 = vadd.f32 1.0, %v4284_v50 }
0x10bd   : > { %4297 = vrcp.f32 %v3121_v62  ;;  %v3123_v14 = vadd.f32 1.0, %v4286_v41 }
0x10be   : > { %4299 = vrcp.f32 %v3122_v13 }
0x10bf   : > { %4301 = vrcp.f32 %v3123_v14 }
0x10c1   : > { %v4288_v52 = vpop.eup %4287 }
0x10c2   : > { %v4290_v42 = vpop.eup %4289  ;;  %v3124_v63 = vadd.f32 1.0, %v4288_v52 }
0x10c3   : > { %v4292_v15 = vpop.eup %4291  ;;  %v3125_v21 = vadd.f32 1.0, %v4290_v42 }
0x10c4   : > { %v4294_v48 = vpop.eup %4293  ;;  %4303 = vrcp.f32 %v3124_v63  ;;  %v3126_v22 = vadd.f32 1.0, %v4292_v15 }
0x10c5   : > { %4305 = vrcp.f32 %v3125_v21  ;;  %v3127_v23 = vadd.f32 1.0, %v4294_v48 }
0x10c6   : > { %v4296_v24 = vpop.eup %4295  ;;  %4307 = vrcp.f32 %v3126_v22 }
0x10c7   : > { %v4298_v25 = vpop.eup %4297  ;;  %4309 = vrcp.f32 %v3127_v23  ;;  %v3144_v28 = vmul.f32 %v4296_v24, %v5358_v43 }
0x10c8   : > { %v4300_v26 = vpop.eup %4299  ;;  %v3145_v32 = vmul.f32 %v4298_v25, %v5360_v45 }
0x10c9   : > { %v4302_v20 = vpop.eup %4301  ;;  %v3146_v29 = vmul.f32 %v4300_v26, %v5363_v51  ;;  %v3689_v51 = vld [vmem:[%s737_s20] ss:$0 sm:$0xff]  ;;  %s5562_s20 = sld [smem:[#allocation21_spill]] }
0x10ca   : > { %v3147_v33 = vmul.f32 %v4302_v20, %v3076_v57 }
0x10cb   : > { %v3152_v34 = vpack.c.bf16 %v3146_v29, %v3144_v28 }
0x10cc   : > { %v3153_v35 = vpack.c.bf16 %v3147_v33, %v3145_v32 }
0x10ce   : > { %v4304_v37 = vpop.eup %4303  ;;  %3323 = vmatprep.mubr.bf16.mxu1 %v3153_v35 }
0x10cf   : > { %v4306_v39 = vpop.eup %4305  ;;  %3324 = vmatmul.mubr.bf16.vlgmr.msra.gmra.mrb[68].mxu1 %v3152_v34  ;;  %v3148_v46 = vmul.f32 %v4304_v37, %v3080_v3  ;;  %p5566_p0 = scmp.ne.s32.totalorder %s5562_s20, 0 }
0x10d0   : > { %v4308_v40 = vpop.eup %4307  ;;  %v3149_v53 = vmul.f32 %v4306_v39, %v3082_v7 }
0x10d1   : > { %v4310_v44 = vpop.eup %4309  ;;  %v3150_v49 = vmul.f32 %v4308_v40, %v3084_v10  ;;  %p4375_p13 = pnand %p4374_p11, %p5566_p0 }
0x10d2   : > { %v3151_v56 = vmul.f32 %v4310_v44, %v3086_v54 }
0x10d3   : > { %v3154_v43 = vpack.c.bf16 %v3150_v49, %v3148_v46  ;;  %p4376_p2 = pneg %p4375_p13 }
0x10d4   : > { %v3155_v58 = vpack.c.bf16 %v3151_v56, %v3149_v53 }
0x10d5   : > { %p4383_p3 = pnand %p4382_p12, %p4376_p2 }
0x10d6   : > { %3331 = vmatprep.mubr.bf16.mxu1 %v3155_v58 }
0x10d7   : > { %3332 = vmatmul.mubr.bf16.gmra.mrb[72].mxu1 %v3154_v43 }
0x11a2   : > { %v3814_v45 = vpop.f32.mrb[68].mxu1 }
0x11a3   : > { %v3815_v57 = vpop.f32.mrb[69].mxu1 }
0x11a4   : > { %v3816_v19 = vadd.f32 %v3815_v57, %v3814_v45  ;;  %v3817_v18 = vpop.f32.mrb[70].mxu1 }
0x11a5   : > { %v3818_v30 = vpop.f32.mrb[71].mxu1 }
0x11a6   : > { %v3326_v0 = vadd.f32 %v3816_v19, %v3689_v51  ;;  %v3819_v2 = vadd.f32 %v3818_v30, %v3817_v18 }
0x11a8   : > { %v3340_v1 = vadd.f32 %v3326_v0, %v5289_v55  ;;  %v3329_v3 = vadd.f32 %v3819_v2, %v3689_v51 }
0x11aa   : > { %3344 = vst.msk [vmem:[%s4851_s12] sm:$0xff] %vm767_vm1, %v3340_v1  ;;  %v3341_v6 = vadd.f32 %v3329_v3, %v5295_v60  ;;  %v3820_v7 = vpop.f32.mrb[72].mxu1 }
0x11ab   : > { %v3821_v9 = vpop.f32.mrb[73].mxu1 }
0x11ac   : > { %3345 = vst.msk [vmem:[%s4851_s12 + $0x8] sm:$0xff] %vm767_vm1, %v3341_v6  ;;  %v3822_v59 = vadd.f32 %v3821_v9, %v3820_v7  ;;  %v3823_v10 = vpop.f32.mrb[74].mxu1 }
0x11ad   : > { %v3824_v11 = vpop.f32.mrb[75].mxu1 }
0x11ae   : > { %v3334_v47 = vadd.f32 %v3822_v59, %v3689_v51  ;;  %v3825_v54 = vadd.f32 %v3824_v11, %v3823_v10 }
0x11b0   : > { %v3342_v55 = vadd.f32 %v3334_v47, %v5292_v36  ;;  %v3337_v61 = vadd.f32 %v3825_v54, %v3689_v51 }
0x11b2   : > { %3346 = vst.msk [vmem:[%s4851_s12 + $0x10] sm:$0xff] %vm767_vm1, %v3342_v55  ;;  %v3343_v60 = vadd.f32 %v3337_v61, %v5302_v38 }
0x11b4   : > { %3347 = vst.msk [vmem:[%s4851_s12 + $0x18] sm:$0xff] %vm767_vm1, %v3343_v60 }
0x11b5   : > { %4386 = shalt.err (!%p4383_p3)
}
0x11b6   : > { %s4387_s12 = scalar_lea.hbm %s5387_s17, 512  ;;  %s4391_s6 = scalar_lea.hbm %s5564_s10, 1024 }
0x11b7   : > { %p4388_p10 = scmp.ne.s32.totalorder %s5387_s17, %s4387_s12  ;;  %p4392_p4 = scmp.lt.u32.totalorder %s5387_s17, %s5564_s10 }
0x11b8   : > { %p4393_p7 = scmp.lt.u32.totalorder %s4391_s6, %s4387_s12  ;;  %p4395_p11 = scmp.lt.u32.totalorder %s4387_s12, %s5387_s17 }
0x11b9   : > { %p4389_p6 = pnand %p4388_p10, %p5566_p0 }
0x11ba   : > { %p4394_p9 = por %p4393_p7, %p4392_p4 }
0x11bb   : > { %p4390_p1 = pneg %p4389_p6 }
0x11bc   : > { %p4396_p13 = por %p4395_p11, %p4394_p9 }
0x11be   : > { %p4397_p2 = pnand %p4396_p13, %p4390_p1 }
0x11c0   : > { %4400 = shalt.err (!%p4397_p2)
}
0x11c1   : > { %s4514_s14 = smov 128   ;;  %s4515_s15 = smov 8  }
0x11c2   : > { %4036 = dma.vmem_to_hbm [thread:$0]  (%p5566_p0), %s5389_s9, 512, %s5387_s17, %s5398_s13, %s4514_s14, %s4514_s14, %s4515_s15  }
0x11c3 PF: > { %s5567_s16 = sld [smem:[#allocation20_spill]]  ;;  %s5568_s24 = sld [smem:[#allocation12_spill]] }
0x11c4   : > { %s5569_s8 = sld [smem:[#allocation22_spill]] }
0x11c9   : > { %p4053_p5 = scmp.ge.s32.totalorder %s5567_s16, 2  ;;  %s3377_s7 = sand.u32 1, %s5568_s24  }
0x11ca   : > { %p5570_p8 = scmp.ne.s32.totalorder %s5569_s8, 0  ;;  %s3378_s26 = scalar_lea.sflag [#allocation5], %s3377_s7 }
0x11cc   : > { %p4047_p12 = pnand %p4053_p5, %p5570_p8 }
0x11ce   : > { %4454 = dma.done.wait (!%p4047_p12), %s3378_s26, 512  }
0x11cf   : > { %4456 = vsyncadd (!%p4047_p12), %s3378_s26, 4294966784  ;;  %s32_s28 = sadd.s32 1, %s5567_s16   ;;  %s5571_s18 = sld [smem:[#allocation13_spill]] }
0x11d0   : > { %p29_p3 = scmp.ge.s32.totalorder %s32_s28, 8   ;;  %s5572_s19 = sld [smem:[#allocation14_spill]] }
0x11d1   : > { %s5573_s20 = sld [smem:[#allocation26_spill]]  ;;  %s5574_s21 = sld [smem:[#allocation15_spill]] }
0x11d2   : > { %s5575_s22 = sld [smem:[#allocation16_spill]]  ;;  %s5576_s23 = sld [smem:[#allocation25_spill]] }
0x11d3   : > { %s5577_s24 = sld [smem:[#allocation18_spill]]  ;;  %s5578_s25 = sld [smem:[#allocation19_spill]] }
0x11d4   : > { %s5579_s26 = sld [smem:[#allocation23_spill]]  ;;  %s5580_s27 = sld [smem:[#allocation24_spill]] }
0x11d5   :  { %31 = sbr.rel (!%p29_p3) target bundleno = 26 (0x1a), region = 170 }
0x11dc   :  { %3383 = vsyncpa [#allocation4], 1 }
0x11dd   :  { %3385 = vsyncpa [#allocation4 + $0x1], 1 }
0x11de   :  { %3386 = vsyncpa [#allocation7], 1 }
0x11df   :  { %3388 = vsyncpa [#allocation7 + $0x1], 1 }
0x11e0   :  { %3389 = vsyncpa [#allocation5], 1 }
0x11e1   :  { %3391 = vsyncpa [#allocation5 + $0x1], 1 }

</bundles_post_ra>
